<compile_context>
chip_gen: v7x
topology: tpu7x:2x2x1
jax: 0.10.0
libtpu: 0.0.40
codegen_flags: <defaults>
</compile_context>

<pallas_src>
import jax
import jax.numpy as jnp
from jax import lax
from jax.experimental import pallas as pl
from jax.experimental.pallas import tpu as pltpu


# ----------------------------------------------------------------------------
# Architecture constants (from the PyTorch module)
# ----------------------------------------------------------------------------
CIN, L_IN = 5, 60
C1, K1, S1, P1 = 64, 5, 2, 2            # conv1: 5 -> 64, k=5, stride=2, pad=2
C2, K2, S2, P2 = 128, 5, 3, 2           # conv2: 64 -> 128, k=5, stride=3, pad=2
L1 = (L_IN + 2 * P1 - K1) // S1 + 1     # 30
L2 = (L1 + 2 * P2 - K2) // S2 + 1       # 10
D_OUT = 32

# Fused / packed sizes
TAPW = C1                    # 64: per-tap channel width of the fused conv2 LHS
NG1 = K2 * TAPW              # 320: conv2 contraction dim (5 taps x 64 channels)
WIN = S1 * (K2 - 1) + K1     # 13: input receptive field of one conv2 output
STEP = S1 * S2               # 6: input stride between conv2 outputs
KW = 72                      # WIN*CIN = 65 window values, padded to multiple of 8
NOUT = 128                   # lane-dense padded Linear output (sliced to 32)
PAD_L = P1 + S1 * P2         # 6: left zero-pad of input positions
PAD_R = 1                    # 1: right pad (pos 60 = conv1's own zero padding)
TB_MAX = 64                  # max batch-tile per grid step


# ----------------------------------------------------------------------------
# Fused kernel: conv1+ReLU -> conv2+ReLU -> Linear for one batch tile.
# Row order of patches / g1 / f2 inside the tile is (l2, b): row = l2*tb + b.
# ----------------------------------------------------------------------------
def _fused_kernel(patches_ref, w1_ref, b1_ref, w2_ref, b2_ref, w3_ref, b3_ref,
                  out_ref, g1_ref, f2_ref):
    tb = out_ref.shape[0]

    # ---- conv1 folded into the conv2-im2col producer: ONE matmul -----------
    # (tb*10, 72) x (72, 320) -> (tb*10, 320); +bias, ReLU; one aligned store.
    g1 = jnp.dot(patches_ref[...], w1_ref[...],
                 preferred_element_type=jnp.float32)
    g1_ref[...] = jnp.maximum(g1 + b1_ref[...], 0.0)
    # conv2 left padding: rows with l2 == 0 (the first tb rows) read feat1
    # rows -2 / -1 through taps 0 / 1 -> force those 128 lanes to exact zero
    # (ReLU(bias) and the x[0] leak into tap 1 would otherwise pollute them).
    g1_ref[0:tb, 0:2 * TAPW] = jnp.zeros((tb, 2 * TAPW), jnp.float32)

    # ---- conv2: ONE K=320 matmul over the whole tile ------------------------
    f2 = jnp.dot(g1_ref[...], w2_ref[...], preferred_element_type=jnp.float32)
    f2_ref[...] = jnp.maximum(f2 + b2_ref[...], 0.0)

    # ---- Linear: 10 accumulating (tb,128)x(128,128) lane-dense matmuls -----
    # (a single (tb,1280)x(1280,128) dot would need a sublane->lane relayout
    #  of f2 that costs more than the extra MXU pushes it saves)
    acc = jnp.dot(f2_ref[0:tb, :], w3_ref[0],
                  preferred_element_type=jnp.float32)
    for l in range(1, L2):
        acc = acc + jnp.dot(f2_ref[l * tb:(l + 1) * tb, :], w3_ref[l],
                            preferred_element_type=jnp.float32)
    out_ref[...] = (acc + b3_ref[...]).astype(out_ref.dtype)


# ----------------------------------------------------------------------------
# Parameters: raw (PyTorch-layout) init + one-time packing
# ----------------------------------------------------------------------------
def init_params(key):
    ks = jax.random.split(key, 6)
    scale = 0.02
    return {
        "conv1_w": scale * jax.random.normal(ks[0], (C1, CIN, K1), jnp.float32),
        "conv1_b": scale * jax.random.normal(ks[1], (C1,), jnp.float32),
        "conv2_w": scale * jax.random.normal(ks[2], (C2, C1, K2), jnp.float32),
        "conv2_b": scale * jax.random.normal(ks[3], (C2,), jnp.float32),
        "dense_w": scale * jax.random.normal(ks[4], (D_OUT, C2 * L2), jnp.float32),
        "dense_b": scale * jax.random.normal(ks[5], (D_OUT,), jnp.float32),
    }


def pack_params(params):
    """One-time packing; keeps all transposes / pads out of the hot path."""
    # conv1 -> per-window weight: W1big[p*5+c, k2*64+o] = conv1_w[o, c, p-2*k2]
    w1big = jnp.zeros((KW, NG1), jnp.float32)
    for k2 in range(K2):
        for k1 in range(K1):
            p = 2 * k2 + k1
            w1big = w1big.at[p * CIN:(p + 1) * CIN,
                             k2 * TAPW:k2 * TAPW + C1].set(
                                 params["conv1_w"][:, :, k1].T)
    b1t = jnp.tile(params["conv1_b"], K2).reshape(1, NG1)
    # conv2: W2p[k2*64 + c, o] = conv2_w[o, c, k2]
    w2p = jnp.transpose(params["conv2_w"], (2, 1, 0)).reshape(NG1, C2)
    b2p = params["conv2_b"].reshape(1, C2)
    # dense: W3p[l, c, o] = dense_w[o, c*10 + l]  (PyTorch channel-major
    # flatten), output dim padded 32 -> 128 for lane-dense stores.
    w3p = jnp.zeros((L2, C2, NOUT), jnp.float32)
    w3p = w3p.at[:, :, :D_OUT].set(
        jnp.transpose(params["dense_w"].reshape(D_OUT, C2, L2), (2, 1, 0)))
    b3p = jnp.zeros((1, NOUT), jnp.float32).at[0, :D_OUT].set(params["dense_b"])
    return {"w1": w1big, "b1": b1t, "w2": w2p, "b2": b2p, "w3": w3p, "b3": b3p}


# ----------------------------------------------------------------------------
# Forward
# ----------------------------------------------------------------------------
def _round_up(n, m):
    return (n + m - 1) // m * m


@jax.jit
def dance_rhythm_embedding(packed, x):
    """x: (B, 5, 60) float32 -> (B, 32) float32."""
    B = x.shape[0]
    tb = min(TB_MAX, _round_up(B, 8))
    n_tiles = -(-_round_up(B, 8) // tb)
    bp = n_tiles * tb

    # ---- input glue: extract the 13-position receptive-field windows -------
    # (static slices + one stack; no gathers).
    x_nlc = jnp.transpose(x.astype(jnp.float32), (0, 2, 1))          # (B, 60, 5)
    x_nlc = jnp.pad(x_nlc, ((0, bp - B), (PAD_L, PAD_R), (0, 0)))    # (bp, 67, 5)
    wins = jnp.stack(
        [x_nlc[:, STEP * l:STEP * l + WIN, :] for l in range(L2)], axis=0)
    patches = wins.reshape(L2, bp, WIN * CIN)                        # (10, bp, 65)
    patches = jnp.pad(patches, ((0, 0), (0, 0), (0, KW - WIN * CIN)))
    # tile-major, l2-major-within-tile row order: (n_tiles, 10*tb, 72)
    patches = patches.reshape(L2, n_tiles, tb, KW).transpose(1, 0, 2, 3)
    patches = patches.reshape(n_tiles, L2 * tb, KW)
    # TODO(synk): this window extraction is still ~12 tiny XLA ops; fold it
    # into the kernel (input-resident layout) if it shows in e2e profiles.

    out = pl.pallas_call(
        _fused_kernel,
        out_shape=jax.ShapeDtypeStruct((n_tiles, tb, NOUT), jnp.float32),
        grid=(n_tiles,),
        in_specs=[
            pl.BlockSpec((None, L2 * tb, KW), lambda i: (i, 0, 0)),   # patches
            pl.BlockSpec((KW, NG1), lambda i: (0, 0)),                # W1big
            pl.BlockSpec((1, NG1), lambda i: (0, 0)),                 # b1 (tiled)
            pl.BlockSpec((NG1, C2), lambda i: (0, 0)),                # W2p
            pl.BlockSpec((1, C2), lambda i: (0, 0)),                  # b2
            pl.BlockSpec((L2, C2, NOUT), lambda i: (0, 0, 0)),        # W3p
            pl.BlockSpec((1, NOUT), lambda i: (0, 0)),                # b3
        ],
        out_specs=pl.BlockSpec((None, tb, NOUT), lambda i: (i, 0, 0)),
        scratch_shapes=[pltpu.VMEM((L2 * tb, NG1), jnp.float32),      # g1
                        pltpu.VMEM((L2 * tb, C2), jnp.float32)],      # f2
        compiler_params=pltpu.CompilerParams(
            dimension_semantics=("parallel",)),
    )(patches, packed["w1"], packed["b1"], packed["w2"], packed["b2"],
      packed["w3"], packed["b3"])

    return out.reshape(n_tiles * tb, NOUT)[:B, :D_OUT]


# ----------------------------------------------------------------------------
# Pure-JAX reference (mirrors the PyTorch module) for a correctness check
# ----------------------------------------------------------------------------
def reference_forward(params, x):
    def conv1d(x, w, b, stride, padding):
        y = lax.conv_general_dilated(
            x, w, window_strides=(stride,), padding=[(padding, padding)],
            dimension_numbers=("NCH", "OIH", "NCH"))
        return y + b[None, :, None]

    f1 = jnp.maximum(conv1d(x, params["conv1_w"], params["conv1_b"], S1, P1), 0.0)
    f2 = jnp.maximum(conv1d(f1, params["conv2_w"], params["conv2_b"], S2, P2), 0.0)
    flat = f2.reshape(x.shape[0], -1)
    return flat @ params["dense_w"].T + params["dense_b"]


if __name__ == "__main__":
    key = jax.random.PRNGKey(0)
    pkey, xkey = jax.random.split(key)
    params = init_params(pkey)
    packed = pack_params(params)          # one-time packing, not in the hot path

    # Input: (B, C, L) = (2, 5, 60) as implied by Linear(128*10, 32).
    x = jax.random.normal(xkey, (2, CIN, L_IN), dtype=jnp.float32)

    out = jax.block_until_ready(dance_rhythm_embedding(packed, x))
    assert out.shape == (2, D_OUT), out.shape

    ref = jax.block_until_ready(reference_forward(params, x))
    err = float(jnp.max(jnp.abs(out - ref)))
    assert jnp.allclose(out, ref, rtol=1e-2, atol=1e-3), err

    print("KERNEL_OK")
</pallas_src>

<mosaic_0001>
module attributes {stable_mosaic.version = 11 : i64} {
  func.func @_fused_kernel(%arg0: i32, %arg1: memref<1x80x72xf32, #tpu.memory_space<vmem>>, %arg2: memref<72x320xf32, #tpu.memory_space<vmem>>, %arg3: memref<1x320xf32, #tpu.memory_space<vmem>>, %arg4: memref<320x128xf32, #tpu.memory_space<vmem>>, %arg5: memref<1x128xf32, #tpu.memory_space<vmem>>, %arg6: memref<10x128x128xf32, #tpu.memory_space<vmem>>, %arg7: memref<1x128xf32, #tpu.memory_space<vmem>>, %arg8: memref<1x8x128xf32, #tpu.memory_space<vmem>>, %arg9: memref<80x320xf32, #tpu.memory_space<vmem>>, %arg10: memref<80x128xf32, #tpu.memory_space<vmem>>) attributes {dimension_semantics = [#tpu.dimension_semantics<parallel>], iteration_bounds = array<i64: 1>, scalar_prefetch = 0 : i64, scratch_operands = 2 : i64, tpu.core_type = #tpu.core_type<tc>, window_params = [{transform_indices = @transform_0, window_bounds = array<i64: 1, 80, 72>}, {pipeline_mode = #tpu.pipeline_mode<synchronous>, transform_indices = @transform_1, window_bounds = array<i64: 72, 320>}, {pipeline_mode = #tpu.pipeline_mode<synchronous>, transform_indices = @transform_2, window_bounds = array<i64: 1, 320>}, {pipeline_mode = #tpu.pipeline_mode<synchronous>, transform_indices = @transform_3, window_bounds = array<i64: 320, 128>}, {pipeline_mode = #tpu.pipeline_mode<synchronous>, transform_indices = @transform_4, window_bounds = array<i64: 1, 128>}, {pipeline_mode = #tpu.pipeline_mode<synchronous>, transform_indices = @transform_5, window_bounds = array<i64: 10, 128, 128>}, {pipeline_mode = #tpu.pipeline_mode<synchronous>, transform_indices = @transform_6, window_bounds = array<i64: 1, 128>}, {transform_indices = @transform_7, window_bounds = array<i64: 1, 8, 128>}]} {
    %c0 = arith.constant 0 : index
    %c0_0 = arith.constant 0 : index
    %c0_1 = arith.constant 0 : index
    %0 = vector.load %arg1[%c0, %c0_0, %c0_1] : memref<1x80x72xf32, #tpu.memory_space<vmem>>, vector<1x80x72xf32>
    %1 = vector.shape_cast %0 : vector<1x80x72xf32> to vector<80x72xf32>
    %c0_2 = arith.constant 0 : index
    %c0_3 = arith.constant 0 : index
    %2 = vector.load %arg2[%c0_2, %c0_3] : memref<72x320xf32, #tpu.memory_space<vmem>>, vector<72x320xf32>
    %cst = arith.constant dense<0.000000e+00> : vector<80x320xf32>
    %3 = tpu.matmul %1, %2, %cst {dimension_numbers = #tpu.dot_dimension_numbers<[1], [0], [0], [1], [0, 0, 1, 1], [], []>} : vector<80x72xf32>, vector<72x320xf32>, vector<80x320xf32> -> vector<80x320xf32>
    %c0_4 = arith.constant 0 : index
    %c0_5 = arith.constant 0 : index
    %4 = vector.load %arg3[%c0_4, %c0_5] : memref<1x320xf32, #tpu.memory_space<vmem>>, vector<1x320xf32>
    %5 = vector.broadcast %4 : vector<1x320xf32> to vector<80x320xf32>
    %6 = arith.addf %3, %5 : vector<80x320xf32>
    %cst_6 = arith.constant 0.000000e+00 : f32
    %7 = vector.broadcast %cst_6 : f32 to vector<80x320xf32>
    %8 = arith.maximumf %6, %7 : vector<80x320xf32>
    %c0_7 = arith.constant 0 : index
    %c0_8 = arith.constant 0 : index
    %9 = vector.load %arg9[%c0_7, %c0_8] : memref<80x320xf32, #tpu.memory_space<vmem>>, vector<80x320xf32>
    tpu.vector_store %arg9[%c0_7, %c0_8], %8 {strides = array<i32>} : memref<80x320xf32, #tpu.memory_space<vmem>>, vector<80x320xf32>,
    %cst_9 = arith.constant 0.000000e+00 : f32
    %10 = vector.broadcast %cst_9 : f32 to vector<8x128xf32>
    %c0_10 = arith.constant 0 : index
    %c0_11 = arith.constant 0 : index
    %11 = vector.load %arg9[%c0_10, %c0_11] : memref<80x320xf32, #tpu.memory_space<vmem>>, vector<8x128xf32>
    tpu.vector_store %arg9[%c0_10, %c0_11], %10 {strides = array<i32>} : memref<80x320xf32, #tpu.memory_space<vmem>>, vector<8x128xf32>,
    %c0_12 = arith.constant 0 : index
    %c0_13 = arith.constant 0 : index
    %12 = vector.load %arg9[%c0_12, %c0_13] : memref<80x320xf32, #tpu.memory_space<vmem>>, vector<80x320xf32>
    %c0_14 = arith.constant 0 : index
    %c0_15 = arith.constant 0 : index
    %13 = vector.load %arg4[%c0_14, %c0_15] : memref<320x128xf32, #tpu.memory_space<vmem>>, vector<320x128xf32>
    %cst_16 = arith.constant dense<0.000000e+00> : vector<80x128xf32>
    %14 = tpu.matmul %12, %13, %cst_16 {dimension_numbers = #tpu.dot_dimension_numbers<[1], [0], [0], [1], [0, 0, 1, 1], [], []>} : vector<80x320xf32>, vector<320x128xf32>, vector<80x128xf32> -> vector<80x128xf32>
    %c0_17 = arith.constant 0 : index
    %c0_18 = arith.constant 0 : index
    %15 = vector.load %arg5[%c0_17, %c0_18] : memref<1x128xf32, #tpu.memory_space<vmem>>, vector<1x128xf32>
    %16 = vector.broadcast %15 : vector<1x128xf32> to vector<80x128xf32>
    %17 = arith.addf %14, %16 : vector<80x128xf32>
    %cst_19 = arith.constant 0.000000e+00 : f32
    %18 = vector.broadcast %cst_19 : f32 to vector<80x128xf32>
    %19 = arith.maximumf %17, %18 : vector<80x128xf32>
    %c0_20 = arith.constant 0 : index
    %c0_21 = arith.constant 0 : index
    %20 = vector.load %arg10[%c0_20, %c0_21] : memref<80x128xf32, #tpu.memory_space<vmem>>, vector<80x128xf32>
    tpu.vector_store %arg10[%c0_20, %c0_21], %19 {strides = array<i32>} : memref<80x128xf32, #tpu.memory_space<vmem>>, vector<80x128xf32>,
    %c0_22 = arith.constant 0 : index
    %c0_23 = arith.constant 0 : index
    %21 = vector.load %arg10[%c0_22, %c0_23] : memref<80x128xf32, #tpu.memory_space<vmem>>, vector<8x128xf32>
    %c0_24 = arith.constant 0 : index
    %c0_25 = arith.constant 0 : index
    %c0_26 = arith.constant 0 : index
    %22 = vector.load %arg6[%c0_24, %c0_25, %c0_26] : memref<10x128x128xf32, #tpu.memory_space<vmem>>, vector<1x128x128xf32>
    %23 = vector.shape_cast %22 : vector<1x128x128xf32> to vector<128x128xf32>
    %cst_27 = arith.constant dense<0.000000e+00> : vector<8x128xf32>
    %24 = tpu.matmul %21, %23, %cst_27 {dimension_numbers = #tpu.dot_dimension_numbers<[1], [0], [0], [1], [0, 0, 1, 1], [], []>} : vector<8x128xf32>, vector<128x128xf32>, vector<8x128xf32> -> vector<8x128xf32>
    %c8 = arith.constant 8 : index
    %c0_28 = arith.constant 0 : index
    %25 = vector.load %arg10[%c8, %c0_28] : memref<80x128xf32, #tpu.memory_space<vmem>>, vector<8x128xf32>
    %c1 = arith.constant 1 : index
    %c0_29 = arith.constant 0 : index
    %c0_30 = arith.constant 0 : index
    %26 = vector.load %arg6[%c1, %c0_29, %c0_30] : memref<10x128x128xf32, #tpu.memory_space<vmem>>, vector<1x128x128xf32>
    %27 = vector.shape_cast %26 : vector<1x128x128xf32> to vector<128x128xf32>
    %cst_31 = arith.constant dense<0.000000e+00> : vector<8x128xf32>
    %28 = tpu.matmul %25, %27, %cst_31 {dimension_numbers = #tpu.dot_dimension_numbers<[1], [0], [0], [1], [0, 0, 1, 1], [], []>} : vector<8x128xf32>, vector<128x128xf32>, vector<8x128xf32> -> vector<8x128xf32>
    %29 = arith.addf %24, %28 : vector<8x128xf32>
    %c16 = arith.constant 16 : index
    %c0_32 = arith.constant 0 : index
    %30 = vector.load %arg10[%c16, %c0_32] : memref<80x128xf32, #tpu.memory_space<vmem>>, vector<8x128xf32>
    %c2 = arith.constant 2 : index
    %c0_33 = arith.constant 0 : index
    %c0_34 = arith.constant 0 : index
    %31 = vector.load %arg6[%c2, %c0_33, %c0_34] : memref<10x128x128xf32, #tpu.memory_space<vmem>>, vector<1x128x128xf32>
    %32 = vector.shape_cast %31 : vector<1x128x128xf32> to vector<128x128xf32>
    %cst_35 = arith.constant dense<0.000000e+00> : vector<8x128xf32>
    %33 = tpu.matmul %30, %32, %cst_35 {dimension_numbers = #tpu.dot_dimension_numbers<[1], [0], [0], [1], [0, 0, 1, 1], [], []>} : vector<8x128xf32>, vector<128x128xf32>, vector<8x128xf32> -> vector<8x128xf32>
    %34 = arith.addf %29, %33 : vector<8x128xf32>
    %c24 = arith.constant 24 : index
    %c0_36 = arith.constant 0 : index
    %35 = vector.load %arg10[%c24, %c0_36] : memref<80x128xf32, #tpu.memory_space<vmem>>, vector<8x128xf32>
    %c3 = arith.constant 3 : index
    %c0_37 = arith.constant 0 : index
    %c0_38 = arith.constant 0 : index
    %36 = vector.load %arg6[%c3, %c0_37, %c0_38] : memref<10x128x128xf32, #tpu.memory_space<vmem>>, vector<1x128x128xf32>
    %37 = vector.shape_cast %36 : vector<1x128x128xf32> to vector<128x128xf32>
    %cst_39 = arith.constant dense<0.000000e+00> : vector<8x128xf32>
    %38 = tpu.matmul %35, %37, %cst_39 {dimension_numbers = #tpu.dot_dimension_numbers<[1], [0], [0], [1], [0, 0, 1, 1], [], []>} : vector<8x128xf32>, vector<128x128xf32>, vector<8x128xf32> -> vector<8x128xf32>
    %39 = arith.addf %34, %38 : vector<8x128xf32>
    %c32 = arith.constant 32 : index
    %c0_40 = arith.constant 0 : index
    %40 = vector.load %arg10[%c32, %c0_40] : memref<80x128xf32, #tpu.memory_space<vmem>>, vector<8x128xf32>
    %c4 = arith.constant 4 : index
    %c0_41 = arith.constant 0 : index
    %c0_42 = arith.constant 0 : index
    %41 = vector.load %arg6[%c4, %c0_41, %c0_42] : memref<10x128x128xf32, #tpu.memory_space<vmem>>, vector<1x128x128xf32>
    %42 = vector.shape_cast %41 : vector<1x128x128xf32> to vector<128x128xf32>
    %cst_43 = arith.constant dense<0.000000e+00> : vector<8x128xf32>
    %43 = tpu.matmul %40, %42, %cst_43 {dimension_numbers = #tpu.dot_dimension_numbers<[1], [0], [0], [1], [0, 0, 1, 1], [], []>} : vector<8x128xf32>, vector<128x128xf32>, vector<8x128xf32> -> vector<8x128xf32>
    %44 = arith.addf %39, %43 : vector<8x128xf32>
    %c40 = arith.constant 40 : index
    %c0_44 = arith.constant 0 : index
    %45 = vector.load %arg10[%c40, %c0_44] : memref<80x128xf32, #tpu.memory_space<vmem>>, vector<8x128xf32>
    %c5 = arith.constant 5 : index
    %c0_45 = arith.constant 0 : index
    %c0_46 = arith.constant 0 : index
    %46 = vector.load %arg6[%c5, %c0_45, %c0_46] : memref<10x128x128xf32, #tpu.memory_space<vmem>>, vector<1x128x128xf32>
    %47 = vector.shape_cast %46 : vector<1x128x128xf32> to vector<128x128xf32>
    %cst_47 = arith.constant dense<0.000000e+00> : vector<8x128xf32>
    %48 = tpu.matmul %45, %47, %cst_47 {dimension_numbers = #tpu.dot_dimension_numbers<[1], [0], [0], [1], [0, 0, 1, 1], [], []>} : vector<8x128xf32>, vector<128x128xf32>, vector<8x128xf32> -> vector<8x128xf32>
    %49 = arith.addf %44, %48 : vector<8x128xf32>
    %c48 = arith.constant 48 : index
    %c0_48 = arith.constant 0 : index
    %50 = vector.load %arg10[%c48, %c0_48] : memref<80x128xf32, #tpu.memory_space<vmem>>, vector<8x128xf32>
    %c6 = arith.constant 6 : index
    %c0_49 = arith.constant 0 : index
    %c0_50 = arith.constant 0 : index
    %51 = vector.load %arg6[%c6, %c0_49, %c0_50] : memref<10x128x128xf32, #tpu.memory_space<vmem>>, vector<1x128x128xf32>
    %52 = vector.shape_cast %51 : vector<1x128x128xf32> to vector<128x128xf32>
    %cst_51 = arith.constant dense<0.000000e+00> : vector<8x128xf32>
    %53 = tpu.matmul %50, %52, %cst_51 {dimension_numbers = #tpu.dot_dimension_numbers<[1], [0], [0], [1], [0, 0, 1, 1], [], []>} : vector<8x128xf32>, vector<128x128xf32>, vector<8x128xf32> -> vector<8x128xf32>
    %54 = arith.addf %49, %53 : vector<8x128xf32>
    %c56 = arith.constant 56 : index
    %c0_52 = arith.constant 0 : index
    %55 = vector.load %arg10[%c56, %c0_52] : memref<80x128xf32, #tpu.memory_space<vmem>>, vector<8x128xf32>
    %c7 = arith.constant 7 : index
    %c0_53 = arith.constant 0 : index
    %c0_54 = arith.constant 0 : index
    %56 = vector.load %arg6[%c7, %c0_53, %c0_54] : memref<10x128x128xf32, #tpu.memory_space<vmem>>, vector<1x128x128xf32>
    %57 = vector.shape_cast %56 : vector<1x128x128xf32> to vector<128x128xf32>
    %cst_55 = arith.constant dense<0.000000e+00> : vector<8x128xf32>
    %58 = tpu.matmul %55, %57, %cst_55 {dimension_numbers = #tpu.dot_dimension_numbers<[1], [0], [0], [1], [0, 0, 1, 1], [], []>} : vector<8x128xf32>, vector<128x128xf32>, vector<8x128xf32> -> vector<8x128xf32>
    %59 = arith.addf %54, %58 : vector<8x128xf32>
    %c64 = arith.constant 64 : index
    %c0_56 = arith.constant 0 : index
    %60 = vector.load %arg10[%c64, %c0_56] : memref<80x128xf32, #tpu.memory_space<vmem>>, vector<8x128xf32>
    %c8_57 = arith.constant 8 : index
    %c0_58 = arith.constant 0 : index
    %c0_59 = arith.constant 0 : index
    %61 = vector.load %arg6[%c8_57, %c0_58, %c0_59] : memref<10x128x128xf32, #tpu.memory_space<vmem>>, vector<1x128x128xf32>
    %62 = vector.shape_cast %61 : vector<1x128x128xf32> to vector<128x128xf32>
    %cst_60 = arith.constant dense<0.000000e+00> : vector<8x128xf32>
    %63 = tpu.matmul %60, %62, %cst_60 {dimension_numbers = #tpu.dot_dimension_numbers<[1], [0], [0], [1], [0, 0, 1, 1], [], []>} : vector<8x128xf32>, vector<128x128xf32>, vector<8x128xf32> -> vector<8x128xf32>
    %64 = arith.addf %59, %63 : vector<8x128xf32>
    %c72 = arith.constant 72 : index
    %c0_61 = arith.constant 0 : index
    %65 = vector.load %arg10[%c72, %c0_61] : memref<80x128xf32, #tpu.memory_space<vmem>>, vector<8x128xf32>
    %c9 = arith.constant 9 : index
    %c0_62 = arith.constant 0 : index
    %c0_63 = arith.constant 0 : index
    %66 = vector.load %arg6[%c9, %c0_62, %c0_63] : memref<10x128x128xf32, #tpu.memory_space<vmem>>, vector<1x128x128xf32>
    %67 = vector.shape_cast %66 : vector<1x128x128xf32> to vector<128x128xf32>
    %cst_64 = arith.constant dense<0.000000e+00> : vector<8x128xf32>
    %68 = tpu.matmul %65, %67, %cst_64 {dimension_numbers = #tpu.dot_dimension_numbers<[1], [0], [0], [1], [0, 0, 1, 1], [], []>} : vector<8x128xf32>, vector<128x128xf32>, vector<8x128xf32> -> vector<8x128xf32>
    %69 = arith.addf %64, %68 : vector<8x128xf32>
    %c0_65 = arith.constant 0 : index
    %c0_66 = arith.constant 0 : index
    %70 = vector.load %arg7[%c0_65, %c0_66] : memref<1x128xf32, #tpu.memory_space<vmem>>, vector<1x128xf32>
    %71 = vector.broadcast %70 : vector<1x128xf32> to vector<8x128xf32>
    %72 = arith.addf %69, %71 : vector<8x128xf32>
    %c0_67 = arith.constant 0 : index
    %c0_68 = arith.constant 0 : index
    %c0_69 = arith.constant 0 : index
    %73 = vector.load %arg8[%c0_67, %c0_68, %c0_69] : memref<1x8x128xf32, #tpu.memory_space<vmem>>, vector<1x8x128xf32>
    %74 = vector.shape_cast %73 : vector<1x8x128xf32> to vector<8x128xf32>
    %75 = vector.shape_cast %72 : vector<8x128xf32> to vector<1x8x128xf32>
    tpu.vector_store %arg8[%c0_67, %c0_68, %c0_69], %75 {strides = array<i32>} : memref<1x8x128xf32, #tpu.memory_space<vmem>>, vector<1x8x128xf32>,
    return
  }
  func.func @transform_0(%arg0: i32) -> (i32, i32, i32) {
    %c0_i32 = arith.constant 0 : i32
    %c0_i32_0 = arith.constant 0 : i32
    %c0_i32_1 = arith.constant 0 : i32
    return %arg0, %c0_i32, %c0_i32_0 : i32, i32, i32
  }
  func.func @transform_1(%arg0: i32) -> (i32, i32) {
    %c0_i32 = arith.constant 0 : i32
    %c0_i32_0 = arith.constant 0 : i32
    %c0_i32_1 = arith.constant 0 : i32
    return %c0_i32, %c0_i32_0 : i32, i32
  }
  func.func @transform_2(%arg0: i32) -> (i32, i32) {
    %c0_i32 = arith.constant 0 : i32
    %c0_i32_0 = arith.constant 0 : i32
    %c0_i32_1 = arith.constant 0 : i32
    return %c0_i32, %c0_i32_0 : i32, i32
  }
  func.func @transform_3(%arg0: i32) -> (i32, i32) {
    %c0_i32 = arith.constant 0 : i32
    %c0_i32_0 = arith.constant 0 : i32
    %c0_i32_1 = arith.constant 0 : i32
    return %c0_i32, %c0_i32_0 : i32, i32
  }
  func.func @transform_4(%arg0: i32) -> (i32, i32) {
    %c0_i32 = arith.constant 0 : i32
    %c0_i32_0 = arith.constant 0 : i32
    %c0_i32_1 = arith.constant 0 : i32
    return %c0_i32, %c0_i32_0 : i32, i32
  }
  func.func @transform_5(%arg0: i32) -> (i32, i32, i32) {
    %c0_i32 = arith.constant 0 : i32
    %c0_i32_0 = arith.constant 0 : i32
    %c0_i32_1 = arith.constant 0 : i32
    %c0_i32_2 = arith.constant 0 : i32
    return %c0_i32, %c0_i32_0, %c0_i32_1 : i32, i32, i32
  }
  func.func @transform_6(%arg0: i32) -> (i32, i32) {
    %c0_i32 = arith.constant 0 : i32
    %c0_i32_0 = arith.constant 0 : i32
    %c0_i32_1 = arith.constant 0 : i32
    return %c0_i32, %c0_i32_0 : i32, i32
  }
  func.func @transform_7(%arg0: i32) -> (i32, i32, i32) {
    %c0_i32 = arith.constant 0 : i32
    %c0_i32_0 = arith.constant 0 : i32
    %c0_i32_1 = arith.constant 0 : i32
    return %arg0, %c0_i32, %c0_i32_0 : i32, i32, i32
  }
}

</mosaic_0001>

<bundles_post_ra>
// kernel: dance_rhythm_embedding.1
= control target key start
LH: loop header
LB: loop body
LE: loop exit
PB: predicated region body
PF: predicated region fallthrough
CT: control target
= control target key end

     0   :  { %v2853_v3 = vmov 0.0   ;;  %vm80_vm0 = vcmask 588800   ;;  %vm383_vm1 = vcmask 523264   ;;  %vm2855_vm2 = vmmov 0   ;;  %s3844_s1 = inlined_call_operand.vmem [shape: f32[72,320], index: 1, kind: input, shape index: {}]   ;;  %s3845_s0 = inlined_call_operand.vmem [shape: f32[1,80,72], index: 0, kind: input, shape index: {}]   ;;  %s3846_s3 = inlined_call_operand.vmem [shape: f32[320,128], index: 3, kind: input, shape index: {}]   ;;  %s3847_s2 = inlined_call_operand.vmem [shape: f32[1,320], index: 2, kind: input, shape index: {}]   ;;  %s3848_s5 = inlined_call_operand.vmem [shape: f32[10,128,128], index: 5, kind: input, shape index: {}]   ;;  %s3849_s4 = inlined_call_operand.vmem [shape: f32[1,128], index: 4, kind: input, shape index: {}]   ;;  %s3850_s6 = inlined_call_operand.vmem [shape: f32[1,128], index: 6, kind: input, shape index: {}]   ;;  %s3851_s7 = inlined_call_operand.vmem [shape: f32[1,8,128], index: 7, kind: output, shape index: {}]  }
   0x1   :  { %v37_v0 = vld [vmem:[%s3844_s1 + $0x8] sm:$0xff]  ;;  %v40_v1 = vld [vmem:[%s3844_s1 + $0x20] sm:$0xff]  ;;  %175 = vmatprep.mubr.f32.mxu0 %v2853_v3  ;;  %412 = vst [vmem:[#allocation2] sm:$0xff] %v2853_v3  ;;  %v39_v5 = vld [vmem:[%s3844_s1 + $0x18] sm:$0xff] }
   0x2   :  { %v36_v2 = vld [vmem:[%s3844_s1] sm:$0xff]  ;;  %v2529_v4 = vpack.c.bf16 %v40_v1, %v37_v0  ;;  %v43_v6 = vld [vmem:[%s3844_s1 + $0x38] sm:$0xff]  ;;  %v46_v7 = vld [vmem:[%s3844_s1 + $0x50] sm:$0xff] }
   0x3   :  { %v2531_v8 = vpack.c.bf16 %v39_v5, %v36_v2  ;;  %v2533_v9 = vpack.c.bf16 %v46_v7, %v43_v6  ;;  %v38_v10 = vld [vmem:[%s3844_s1 + $0x10] sm:$0xff]  ;;  %v41_v11 = vld [vmem:[%s3844_s1 + $0x28] sm:$0xff]  ;;  %v52_v16 = vld [vmem:[%s3844_s1 + $0x80] sm:$0xff] }
   0x4   :  { %v42_v12 = vld [vmem:[%s3844_s1 + $0x30] sm:$0xff]  ;;  %2530 = vmatprep.subr.bf16.mxu0 %v2529_v4  ;;  %v2545_v13 = vpack.c.bf16 %v41_v11, %v38_v10  ;;  %v45_v14 = vld [vmem:[%s3844_s1 + $0x48] sm:$0xff]  ;;  %v44_v18 = vld [vmem:[%s3844_s1 + $0x40] sm:$0xff] }
   0x5   :  { %v49_v15 = vld [vmem:[%s3844_s1 + $0x68] sm:$0xff]  ;;  %2532 = vmatpush1.bf16.msra.mxu0 %v2531_v8  ;;  %v2535_v17 = vpack.c.bf16 %v45_v14, %v42_v12  ;;  %v47_v19 = vld [vmem:[%s3844_s1 + $0x58] sm:$0xff]  ;;  %v48_v22 = vld [vmem:[%s3844_s1 + $0x60] sm:$0xff] }
   0x6   :  { %2534 = vmatprep.subr.bf16.mxu0 %v2533_v9  ;;  %2546 = vmatprep.subr.bf16.mxu1 %v2545_v13  ;;  %v2537_v20 = vpack.c.bf16 %v52_v16, %v49_v15  ;;  %v2549_v21 = vpack.c.bf16 %v47_v19, %v44_v18  ;;  %v51_v23 = vld [vmem:[%s3844_s1 + $0x78] sm:$0xff]  ;;  %v58_v25 = vld [vmem:[%s3844_s1 + $0xb0] sm:$0xff]  ;;  %v53_v27 = vld [vmem:[%s3844_s1 + $0x88] sm:$0xff] }
   0x7   :  { %v55_v24 = vld [vmem:[%s3844_s1 + $0x98] sm:$0xff]  ;;  %2548 = vmatpush3.bf16.msra.mxu1 %v2545_v13  ;;  %v50_v26 = vld [vmem:[%s3844_s1 + $0x70] sm:$0xff]  ;;  %v2539_v29 = vpack.c.bf16 %v51_v23, %v48_v22  ;;  %v56_v30 = vld [vmem:[%s3844_s1 + $0xa0] sm:$0xff] }
   0x8   :  { %2550 = vmatprep.subr.bf16.mxu1 %v2549_v21  ;;  %v2553_v28 = vpack.c.bf16 %v53_v27, %v50_v26  ;;  %v59_v31 = vld [vmem:[%s3844_s1 + $0xb8] sm:$0xff]  ;;  %v26_v32 = vld [vmem:[%s3845_s0] sm:$0xff]  ;;  %v2541_v33 = vpack.c.bf16 %v58_v25, %v55_v24  ;;  %v54_v34 = vld [vmem:[%s3844_s1 + $0x90] sm:$0xff] }
   0x9   :  { %2536 = vmatpush1.bf16.msra.mxu0 %v2535_v17  ;;  %v57_v35 = vld [vmem:[%s3844_s1 + $0xa8] sm:$0xff]  ;;  %2133 = vmatprep.mubr.msk.f32.mxu1 %vm80_vm0, %v26_v32  ;;  %v2557_v36 = vpack.c.bf16 %v59_v31, %v56_v30  ;;  %v475_v39 = vld [vmem:[%s3846_s3 + $0x100] sm:$0xff]  ;;  %v62_v41 = vld [vmem:[%s3844_s1 + $0xd0] sm:$0xff] }
   0xa   :  { %2538 = vmatprep.subr.bf16.mxu0 %v2537_v20  ;;  %v2543_v37 = vpack.c.bf16 %v57_v35, %v54_v34  ;;  %v61_v38 = vld [vmem:[%s3844_s1 + $0xc8] sm:$0xff]  ;;  %v459_v42 = vld [vmem:[%s3846_s3 + $0x80] sm:$0xff]  ;;  %v461_v48 = vld [vmem:[%s3846_s3 + $0x90] sm:$0xff] }
   0xb   :  { %2552 = vmatpush3.bf16.msra.mxu1 %v2549_v21  ;;  %v476_v40 = vld [vmem:[%s3846_s3 + $0x108] sm:$0xff]  ;;  %v60_v44 = vld [vmem:[%s3844_s1 + $0xc0] sm:$0xff]  ;;  %v462_v49 = vld [vmem:[%s3846_s3 + $0x98] sm:$0xff] }
   0xc   :  { %2554 = vmatprep.subr.bf16.mxu1 %v2553_v28  ;;  %v460_v43 = vld [vmem:[%s3846_s3 + $0x88] sm:$0xff]  ;;  %v2593_v45 = vpack.c.bf16 %v476_v40, %v475_v39  ;;  %v443_v46 = vld [vmem:[%s3846_s3] sm:$0xff]  ;;  %v477_v53 = vld [vmem:[%s3846_s3 + $0x110] sm:$0xff]  ;;  %v2565_v56 = vpack.c.bf16 %v462_v49, %v461_v48  ;;  %v65_v48 = vlaneseq }
   0xd   :  { %2540 = vmatpush1.bf16.msra.mxu0 %v2539_v29  ;;  %v444_v47 = vld [vmem:[%s3846_s3 + $0x8] sm:$0xff]  ;;  %v2561_v50 = vpack.c.bf16 %v460_v43, %v459_v42  ;;  %v478_v54 = vld [vmem:[%s3846_s3 + $0x118] sm:$0xff]  ;;  %v28_v55 = vld [vmem:[%s3845_s0 + $0x10] sm:$0xff] }
   0xe   :  { %2542 = vmatprep.subr.bf16.mxu0 %v2541_v33  ;;  %v27_v51 = vld [vmem:[%s3845_s0 + $0x8] sm:$0xff]  ;;  %v2563_v52 = vpack.c.bf16 %v444_v47, %v443_v46  ;;  %v445_v57 = vld [vmem:[%s3846_s3 + $0x10] sm:$0xff]  ;;  %v446_v58 = vld [vmem:[%s3846_s3 + $0x18] sm:$0xff]  ;;  %v2597_v61 = vpack.c.bf16 %v478_v54, %v477_v53  ;;  %v2854_v47 = vmov 0.0|0.0   ;;  %v66_v49 = vshrl.u32 %v65_v48, 7 }
   0xf   :  { %2556 = vmatpush3.bf16.msra.mxu1 %v2553_v28  ;;  %v463_v59 = vld [vmem:[%s3846_s3 + $0xa0] sm:$0xff]  ;;  %v464_v60 = vld [vmem:[%s3846_s3 + $0xa8] sm:$0xff]  ;;  %v29_v62 = vld [vmem:[%s3845_s0 + $0x18] sm:$0xff]  ;;  %v2567_v63 = vpack.c.bf16 %v446_v58, %v445_v57 }
  0x10   :  { %2558 = vmatprep.subr.bf16.mxu1 %v2557_v36  ;;  %v30_v0 = vld [vmem:[%s3845_s0 + $0x20] sm:$0xff]  ;;  %v2569_v1 = vpack.c.bf16 %v464_v60, %v463_v59  ;;  %v448_v4 = vld [vmem:[%s3846_s3 + $0x28] sm:$0xff]  ;;  %v465_v5 = vld [vmem:[%s3846_s3 + $0xb0] sm:$0xff]  ;;  %v67_v53 = vsub.s32 0, %v66_v49 }
  0x11   :  { %2544 = vmatpush1.bf16.msra.mxu0 %v2543_v37  ;;  %v447_v2 = vld [vmem:[%s3846_s3 + $0x20] sm:$0xff]  ;;  %v466_v6 = vld [vmem:[%s3846_s3 + $0xb8] sm:$0xff]  ;;  %v31_v7 = vld [vmem:[%s3845_s0 + $0x28] sm:$0xff] }
  0x12   :  { %127 = vmatprep.subr.mxu0 %v61_v38  ;;  %v2571_v8 = vpack.c.bf16 %v448_v4, %v447_v2  ;;  %v32_v9 = vld [vmem:[%s3845_s0 + $0x30] sm:$0xff]  ;;  %v2573_v10 = vpack.c.bf16 %v466_v6, %v465_v5  ;;  %v450_v12 = vld [vmem:[%s3846_s3 + $0x38] sm:$0xff]  ;;  %v467_v13 = vld [vmem:[%s3846_s3 + $0xc0] sm:$0xff] }
  0x13   :  { %2560 = vmatpush3.bf16.msra.mxu1 %v2557_v36  ;;  %v449_v11 = vld [vmem:[%s3846_s3 + $0x30] sm:$0xff]  ;;  %v468_v14 = vld [vmem:[%s3846_s3 + $0xc8] sm:$0xff]  ;;  %v33_v15 = vld [vmem:[%s3845_s0 + $0x38] sm:$0xff] }
  0x14   :  { %2131 = vmatprep.subr.mxu1 %v62_v41  ;;  %v2575_v16 = vpack.c.bf16 %v450_v12, %v449_v11  ;;  %v34_v17 = vld [vmem:[%s3845_s0 + $0x40] sm:$0xff]  ;;  %v2577_v18 = vpack.c.bf16 %v468_v14, %v467_v13  ;;  %v35_v19 = vld [vmem:[%s3845_s0 + $0x48] sm:$0xff]  ;;  %v469_v23 = vld [vmem:[%s3846_s3 + $0xd0] sm:$0xff] }
  0x15   :  { %128 = vmatpush1.msra.mxu0 %v60_v44  ;;  %v451_v20 = vld [vmem:[%s3846_s3 + $0x40] sm:$0xff]  ;;  %v452_v21 = vld [vmem:[%s3846_s3 + $0x48] sm:$0xff]  ;;  %v470_v24 = vld [vmem:[%s3846_s3 + $0xd8] sm:$0xff] }
  0x16   :  { %1670 = vmatmul.mubr.msk.f32.vlgmr.msra.gmra.mrb[0].mxu0 %vm80_vm0, %v26_v32  ;;  %2594 = vmatprep.subr.bf16.mxu0 %v2593_v45  ;;  %v2579_v22 = vpack.c.bf16 %v452_v21, %v451_v20  ;;  %v2581_v25 = vpack.c.bf16 %v470_v24, %v469_v23  ;;  %v453_v26 = vld [vmem:[%s3846_s3 + $0x50] sm:$0xff]  ;;  %v454_v27 = vld [vmem:[%s3846_s3 + $0x58] sm:$0xff]  ;;  %v471_v29 = vld [vmem:[%s3846_s3 + $0xe0] sm:$0xff] }
  0x17   :  { %181 = vmatprep.mubr.f32.mxu0 %v2853_v3  ;;  %2132 = vmatpush3.msra.mxu1 %v62_v41  ;;  %v2583_v28 = vpack.c.bf16 %v454_v27, %v453_v26  ;;  %v472_v30 = vld [vmem:[%s3846_s3 + $0xe8] sm:$0xff]  ;;  %v455_v32 = vld [vmem:[%s3846_s3 + $0x60] sm:$0xff]  ;;  %v473_v35 = vld [vmem:[%s3846_s3 + $0xf0] sm:$0xff] }
  0x18   :  { %2134 = vmatmul.mubr.msk.f32.vlgmr.msra.gmra.mrb[0].mxu1 %vm80_vm0, %v27_v51  ;;  %2562 = vmatprep.subr.bf16.mxu1 %v2561_v50  ;;  %v2585_v31 = vpack.c.bf16 %v472_v30, %v471_v29  ;;  %v456_v33 = vld [vmem:[%s3846_s3 + $0x68] sm:$0xff]  ;;  %v474_v36 = vld [vmem:[%s3846_s3 + $0xf8] sm:$0xff]  ;;  %v457_v38 = vld [vmem:[%s3846_s3 + $0x70] sm:$0xff]  ;;  %v71_v50 = vsub.s32 1, %v66_v49 }
  0x19   :  { %2136 = vmatprep.mubr.msk.f32.mxu1 %vm80_vm0, %v28_v55  ;;  %2564 = vmatpush3.bf16.msra.mxu1 %v2563_v52  ;;  %v2587_v34 = vpack.c.bf16 %v456_v33, %v455_v32  ;;  %v2589_v37 = vpack.c.bf16 %v474_v36, %v473_v35  ;;  %v458_v39 = vld [vmem:[%s3846_s3 + $0x78] sm:$0xff]  ;;  %v479_v41 = vld [vmem:[%s3846_s3 + $0x120] sm:$0xff]  ;;  %v480_v42 = vld [vmem:[%s3846_s3 + $0x128] sm:$0xff]  ;;  %v75_v52 = vsub.s32 2, %v66_v49 }
  0x1a   :  { %1671 = vmatmul.mubr.msk.f32.gmra.mrb[2].mxu0 %vm80_vm0, %v27_v51  ;;  %2566 = vmatprep.subr.bf16.mxu1 %v2565_v56  ;;  %v2591_v40 = vpack.c.bf16 %v458_v39, %v457_v38  ;;  %v2601_v43 = vpack.c.bf16 %v480_v42, %v479_v41  ;;  %v481_v44 = vld [vmem:[%s3846_s3 + $0x130] sm:$0xff]  ;;  %v63_v51 = vld [vmem:[%s3847_s2] sm:$0x7]  ;;  %v772_v60 = vld [vmem:[%s3848_s5 + $0x8] sm:$0xff] }
  0x1b   :  { %187 = vmatprep.mubr.f32.mxu0 %v2853_v3  ;;  %2596 = vmatpush3.bf16.msra.mxu0 %v2593_v45  ;;  %v482_v45 = vld [vmem:[%s3846_s3 + $0x138] sm:$0xff]  ;;  %v3163_v54 = vrot.slane %v63_v51, %v71_v50  ;;  %v3167_v57 = vrot.slane %v63_v51, %v67_v53  ;;  %v771_v59 = vld [vmem:[%s3848_s5] sm:$0xff]  ;;  %v1702_v33 = vld [vmem:[%s3848_s5 + $0x88] sm:$0xff] }
  0x1c   :  { %2137 = vmatmul.mubr.msk.f32.gmra.mrb[2].mxu1 %vm80_vm0, %v29_v62  ;;  %2598 = vmatprep.subr.bf16.mxu0 %v2597_v61  ;;  %v2605_v46 = vpack.c.bf16 %v482_v45, %v481_v44  ;;  %v2634_v5 = vpack.c.bf16 %v772_v60, %v771_v59  ;;  %v775_v24 = vld [vmem:[%s3848_s5 + $0x20] sm:$0xff]  ;;  %v777_v41 = vld [vmem:[%s3848_s5 + $0x30] sm:$0xff]  ;;  %v778_v42 = vld [vmem:[%s3848_s5 + $0x38] sm:$0xff] }
  0x1d   :  { %2139 = vmatprep.mubr.msk.f32.mxu1 %vm80_vm0, %v30_v0  ;;  %2568 = vmatpush3.bf16.msra.mxu1 %v2567_v63  ;;  %v1701_v32 = vld [vmem:[%s3848_s5 + $0x80] sm:$0xff]  ;;  %v1703_v53 = vld [vmem:[%s3848_s5 + $0x90] sm:$0xff] }
  0x1e   :  { %1672 = vmatmul.mubr.msk.f32.gmra.mrb[4].mxu0 %vm80_vm0, %v28_v55  ;;  %2570 = vmatprep.subr.bf16.mxu1 %v2569_v1  ;;  %v3165_v55 = vrot.slane %v63_v51, %v75_v52  ;;  %v2610_v48 = vpack.c.bf16 %v1702_v33, %v1701_v32 }
  0x1f   :  { %193 = vmatprep.mubr.f32.mxu0 %v2853_v3  ;;  %2600 = vmatpush3.bf16.msra.mxu0 %v2597_v61 }
  0x20   :  { %2140 = vmatmul.mubr.msk.f32.gmra.mrb[4].mxu1 %vm80_vm0, %v31_v7  ;;  %2602 = vmatprep.subr.bf16.mxu0 %v2601_v43 }
  0x21   :  { %2142 = vmatprep.mubr.msk.f32.mxu1 %vm80_vm0, %v32_v9  ;;  %2572 = vmatpush3.bf16.msra.mxu1 %v2571_v8 }
  0x22   :  { %1673 = vmatmul.mubr.msk.f32.gmra.mrb[6].mxu0 %vm80_vm0, %v29_v62  ;;  %2574 = vmatprep.subr.bf16.mxu1 %v2573_v10  ;;  %v774_v10 = vld [vmem:[%s3848_s5 + $0x18] sm:$0xff] }
  0x23   :  { %199 = vmatprep.mubr.f32.mxu0 %v2853_v3  ;;  %2604 = vmatpush3.bf16.msra.mxu0 %v2601_v43 }
  0x24   :  { %2143 = vmatmul.mubr.msk.f32.gmra.mrb[6].mxu1 %vm80_vm0, %v33_v15  ;;  %2606 = vmatprep.subr.bf16.mxu0 %v2605_v46 }
  0x25   :  { %2145 = vmatprep.mubr.msk.f32.mxu1 %vm80_vm0, %v34_v17  ;;  %2576 = vmatpush3.bf16.msra.mxu1 %v2575_v16 }
  0x26   :  { %1674 = vmatmul.mubr.msk.f32.gmra.mrb[8].mxu0 %vm80_vm0, %v30_v0  ;;  %2578 = vmatprep.subr.bf16.mxu1 %v2577_v18 }
  0x27   :  { %205 = vmatprep.mubr.f32.mxu0 %v2853_v3  ;;  %2608 = vmatpush3.bf16.msra.mxu0 %v2605_v46 }
  0x28   :  { %2146 = vmatmul.mubr.msk.f32.gmra.mrb[8].mxu1 %vm80_vm0, %v35_v19  ;;  %2609 = vmatprep.subr.bf16.mxu0 %v2854_v47 }
  0x29   :  { %2580 = vmatpush3.bf16.msra.mxu1 %v2579_v22 }
  0x2a   :  { %1675 = vmatmul.mubr.msk.f32.gmra.mrb[10].mxu0 %vm80_vm0, %v31_v7  ;;  %2582 = vmatprep.subr.bf16.mxu1 %v2581_v25  ;;  %v776_v25 = vld [vmem:[%s3848_s5 + $0x28] sm:$0xff] }
  0x2b   :  { %211 = vmatprep.mubr.f32.mxu0 %v2853_v3 }
  0x2d   :  { %2584 = vmatpush3.bf16.msra.mxu1 %v2583_v28 }
  0x2e   :  { %1676 = vmatmul.mubr.msk.f32.gmra.mrb[12].mxu0 %vm80_vm0, %v32_v9  ;;  %2586 = vmatprep.subr.bf16.mxu1 %v2585_v31  ;;  %v773_v9 = vld [vmem:[%s3848_s5 + $0x10] sm:$0xff] }
  0x2f   :  { %217 = vmatprep.mubr.f32.mxu0 %v2853_v3  ;;  %v2637_v20 = vpack.c.bf16 %v774_v10, %v773_v9 }
  0x31   :  { %2588 = vmatpush3.bf16.msra.mxu1 %v2587_v34 }
  0x32   :  { %1677 = vmatmul.mubr.msk.f32.gmra.mrb[14].mxu0 %vm80_vm0, %v33_v15  ;;  %2590 = vmatprep.subr.bf16.mxu1 %v2589_v37  ;;  %v2640_v37 = vpack.c.bf16 %v776_v25, %v775_v24 }
  0x33   :  { %223 = vmatprep.mubr.f32.mxu0 %v2853_v3 }
  0x35   :  { %2592 = vmatpush3.bf16.msra.mxu1 %v2591_v40 }
  0x36   :  { %1678 = vmatmul.mubr.msk.f32.gmra.mrb[16].mxu0 %vm80_vm0, %v34_v17  ;;  %2633 = vmatprep.subr.bf16.mxu1 %v2854_v47 }
  0x37   :  { %229 = vmatprep.mubr.f32.mxu0 %v2853_v3 }
  0x3a   :  { %1679 = vmatmul.mubr.msk.f32.gmra.mrb[18].mxu0 %vm80_vm0, %v35_v19 }
  0xe9   :  { %v177_v56 = vpop.f32.mrb[0].mxu0 }
  0xea   :  { %v179_v58 = vpop.f32.mrb[1].mxu0  ;;  %v1704_v56 = vld [vmem:[%s3848_s5 + $0x98] sm:$0xff] }
  0xeb   :  { %v180_v61 = vadd.f32 %v179_v58, %v3163_v54  ;;  %v2135_v62 = vpop.f32.mrb[0].mxu1 }
  0xec   :  { %v308_v63 = vadd.f32 %v2135_v62, %v3165_v55  ;;  %v302_v0 = vpop.f32.mrb[1].mxu1 }
  0xed   :  { %v352_v1 = vmax.f32 %v180_v61, 0.0  ;;  %v183_v2 = vpop.f32.mrb[2].mxu0  ;;  %v303_v4 = vadd.f32 %v302_v0, %v3165_v55  ;;  %v2643_v61 = vpack.c.bf16 %v778_v42, %v777_v41  ;;  %v1709_v41 = vld [vmem:[%s3848_s5 + $0xc0] sm:$0xff]  ;;  %v1710_v42 = vld [vmem:[%s3848_s5 + $0xc8] sm:$0xff] }
  0xee   :  { %v184_v6 = vadd.f32 %v183_v2, %v3167_v57  ;;  %v356_v7 = vmax.f32 %v308_v63, 0.0  ;;  %v185_v8 = vpop.f32.mrb[3].mxu0  ;;  %v780_v2 = vld [vmem:[%s3848_s5 + $0x48] sm:$0xff] }
  0xef   :  { %v186_v11 = vadd.f32 %v185_v8, %v3163_v54  ;;  %v353_v12 = vmax.f32 %v303_v4, 0.0  ;;  %584 = vmatprep.mubr.f32.mxu1 %v352_v1  ;;  %v2138_v13 = vpop.f32.mrb[2].mxu1  ;;  %v779_v1 = vld [vmem:[%s3848_s5 + $0x40] sm:$0xff]  ;;  %v2613_v8 = vpack.c.bf16 %v1704_v56, %v1703_v53 }
  0xf0   :  { %v354_v14 = vmax.f32 %v184_v6, 0.0  ;;  %387 = vst.msk [vmem:[#allocation2 + $0x28] sm:$0xff] %vm383_vm1, %v356_v7  ;;  %585 = vmatmul.mubr.f32.vlgmr.msra.gmra.mrb[10].mxu1 %v2853_v3  ;;  %v318_v15 = vadd.f32 %v2138_v13, %v3165_v55  ;;  %v312_v16 = vpop.f32.mrb[3].mxu1  ;;  %v1705_v13 = vld [vmem:[%s3848_s5 + $0xa0] sm:$0xff] }
  0xf1   :  { %v355_v17 = vmax.f32 %v186_v11, 0.0  ;;  %384 = vst.msk [vmem:[#allocation2 + $0x10] sm:$0xff] %vm383_vm1, %v353_v12  ;;  %v189_v18 = vpop.f32.mrb[4].mxu0  ;;  %v313_v19 = vadd.f32 %v312_v16, %v3165_v55  ;;  %2635 = vmatpush3.bf16.msra.mxu1 %v2634_v5 }
  0xf2   :  { %v190_v21 = vadd.f32 %v189_v18, %v3167_v57  ;;  %v191_v22 = vpop.f32.mrb[5].mxu0  ;;  %v362_v23 = vmax.f32 %v318_v15, 0.0  ;;  %2636 = vmatprep.subr.bf16.mxu1 %v2854_v47  ;;  %v2646_v18 = vpack.c.bf16 %v780_v2, %v779_v1 }
  0xf3   :  { %589 = vmatprep.mubr.f32.mxu1 %v355_v17  ;;  %v192_v26 = vadd.f32 %v191_v22, %v3163_v54  ;;  %v359_v27 = vmax.f32 %v313_v19, 0.0  ;;  %v2141_v28 = vpop.f32.mrb[4].mxu1  ;;  %v781_v22 = vld [vmem:[%s3848_s5 + $0x50] sm:$0xff] }
  0xf4   :  { %590 = vmatmul.mubr.f32.gmra.mrb[12].mxu1 %v354_v14  ;;  %v357_v29 = vmax.f32 %v190_v21, 0.0  ;;  %393 = vst.msk [vmem:[#allocation2 + $0x58] sm:$0xff] %vm383_vm1, %v362_v23  ;;  %v328_v30 = vadd.f32 %v2141_v28, %v3165_v55  ;;  %v322_v31 = vpop.f32.mrb[5].mxu1  ;;  %v1706_v14 = vld [vmem:[%s3848_s5 + $0xa8] sm:$0xff]  ;;  %v782_v23 = vld [vmem:[%s3848_s5 + $0x58] sm:$0xff] }
  0xf5   :  { %v358_v34 = vmax.f32 %v192_v26, 0.0  ;;  %v195_v35 = vpop.f32.mrb[6].mxu0  ;;  %390 = vst.msk [vmem:[#allocation2 + $0x40] sm:$0xff] %vm383_vm1, %v359_v27  ;;  %v323_v36 = vadd.f32 %v322_v31, %v3165_v55  ;;  %2638 = vmatpush3.bf16.msra.mxu1 %v2637_v20  ;;  %v2616_v26 = vpack.c.bf16 %v1706_v14, %v1705_v13  ;;  %v2649_v33 = vpack.c.bf16 %v782_v23, %v781_v22  ;;  %v785_v13 = vld [vmem:[%s3848_s5 + $0x70] sm:$0xff]  ;;  %v786_v14 = vld [vmem:[%s3848_s5 + $0x78] sm:$0xff] }
  0xf6   :  { %v196_v38 = vadd.f32 %v195_v35, %v3167_v57  ;;  %v197_v39 = vpop.f32.mrb[7].mxu0  ;;  %v368_v40 = vmax.f32 %v328_v30, 0.0  ;;  %2639 = vmatprep.subr.bf16.mxu1 %v2854_v47  ;;  %v1708_v30 = vld [vmem:[%s3848_s5 + $0xb8] sm:$0xff] }
  0xf7   :  { %v418_v43 = vld [vmem:[#allocation2 + $0x28] sm:$0xff]  ;;  %v198_v44 = vadd.f32 %v197_v39, %v3163_v54  ;;  %594 = vmatprep.mubr.f32.mxu1 %v358_v34  ;;  %v365_v45 = vmax.f32 %v323_v36, 0.0  ;;  %v2144_v46 = vpop.f32.mrb[6].mxu1 }
  0xf8   :  { %v415_v49 = vld [vmem:[#allocation2 + $0x10] sm:$0xff]  ;;  %v360_v50 = vmax.f32 %v196_v38, 0.0  ;;  %595 = vmatmul.mubr.f32.gmra.mrb[14].mxu1 %v357_v29  ;;  %399 = vst.msk [vmem:[#allocation2 + $0x88] sm:$0xff] %vm383_vm1, %v368_v40  ;;  %v338_v51 = vadd.f32 %v2144_v46, %v3165_v55  ;;  %v332_v52 = vpop.f32.mrb[7].mxu1 }
  0xf9   :  { %2164 = vmatprep.mubr.msk.f32.mxu0 %vm383_vm1, %v415_v49  ;;  %v361_v58 = vmax.f32 %v198_v44, 0.0  ;;  %v201_v59 = vpop.f32.mrb[8].mxu0  ;;  %396 = vst.msk [vmem:[#allocation2 + $0x70] sm:$0xff] %vm383_vm1, %v365_v45  ;;  %v333_v60 = vadd.f32 %v332_v52, %v3165_v55  ;;  %2641 = vmatpush3.bf16.msra.mxu1 %v2640_v37  ;;  %v1707_v29 = vld [vmem:[%s3848_s5 + $0xb0] sm:$0xff] }
  0xfa   :  { %2165 = vmatmul.mubr.msk.f32.vlgmr.msra.gmra.mrb[20].mxu0 %vm383_vm1, %v418_v43  ;;  %v202_v62 = vadd.f32 %v201_v59, %v3167_v57  ;;  %v203_v63 = vpop.f32.mrb[9].mxu0  ;;  %v374_v0 = vmax.f32 %v338_v51, 0.0  ;;  %2642 = vmatprep.subr.bf16.mxu1 %v2854_v47  ;;  %v2619_v38 = vpack.c.bf16 %v1708_v30, %v1707_v29 }
  0xfb   :  { %599 = vmatprep.mubr.f32.mxu1 %v361_v58  ;;  %v424_v4 = vld [vmem:[#allocation2 + $0x58] sm:$0xff]  ;;  %v204_v5 = vadd.f32 %v203_v63, %v3163_v54  ;;  %v371_v6 = vmax.f32 %v333_v60, 0.0  ;;  %v2147_v7 = vpop.f32.mrb[8].mxu1  ;;  %2611 = vmatpush3.bf16.msra.mxu0 %v2610_v48 }
  0xfc   :  { %600 = vmatmul.mubr.f32.gmra.mrb[16].mxu1 %v360_v50  ;;  %v421_v9 = vld [vmem:[#allocation2 + $0x40] sm:$0xff]  ;;  %v363_v10 = vmax.f32 %v202_v62, 0.0  ;;  %405 = vst.msk [vmem:[#allocation2 + $0xb8] sm:$0xff] %vm383_vm1, %v374_v0  ;;  %v348_v11 = vadd.f32 %v2147_v7, %v3165_v55  ;;  %v342_v12 = vpop.f32.mrb[9].mxu1  ;;  %2612 = vmatprep.subr.bf16.mxu0 %v2854_v47  ;;  %v2622_v50 = vpack.c.bf16 %v1710_v42, %v1709_v41  ;;  %v1712_v7 = vld [vmem:[%s3848_s5 + $0xd8] sm:$0xff] }
  0xfd   :  { %2167 = vmatprep.mubr.msk.f32.mxu0 %vm383_vm1, %v421_v9  ;;  %v364_v15 = vmax.f32 %v204_v5, 0.0  ;;  %v207_v16 = vpop.f32.mrb[10].mxu0  ;;  %402 = vst.msk [vmem:[#allocation2 + $0xa0] sm:$0xff] %vm383_vm1, %v371_v6  ;;  %v343_v17 = vadd.f32 %v342_v12, %v3165_v55  ;;  %2644 = vmatpush3.bf16.msra.mxu1 %v2643_v61  ;;  %v1711_v6 = vld [vmem:[%s3848_s5 + $0xd0] sm:$0xff] }
  0xfe   :  { %2168 = vmatmul.mubr.msk.f32.gmra.mrb[22].mxu0 %vm383_vm1, %v424_v4  ;;  %v208_v19 = vadd.f32 %v207_v16, %v3167_v57  ;;  %v209_v20 = vpop.f32.mrb[11].mxu0  ;;  %v380_v21 = vmax.f32 %v348_v11, 0.0  ;;  %2645 = vmatprep.subr.bf16.mxu1 %v2854_v47  ;;  %v1714_v11 = vld [vmem:[%s3848_s5 + $0xe8] sm:$0xff]  ;;  %v2655_v16 = vpack.c.bf16 %v786_v14, %v785_v13 }
  0xff   :  { %v210_v55 = vadd.f32 %v209_v20, %v3163_v54  ;;  %604 = vmatprep.mubr.f32.mxu1 %v364_v15  ;;  %v430_v24 = vld [vmem:[#allocation2 + $0x88] sm:$0xff]  ;;  %v377_v25 = vmax.f32 %v343_v17, 0.0  ;;  %2614 = vmatpush3.bf16.msra.mxu0 %v2613_v8  ;;  %v2625_v8 = vpack.c.bf16 %v1712_v7, %v1711_v6  ;;  %v1715_v15 = vld [vmem:[%s3848_s5 + $0xf0] sm:$0xff]  ;;  %v1716_v17 = vld [vmem:[%s3848_s5 + $0xf8] sm:$0xff] }
 0x100   :  { %v366_v27 = vmax.f32 %v208_v19, 0.0  ;;  %605 = vmatmul.mubr.f32.gmra.mrb[18].mxu1 %v363_v10  ;;  %v427_v28 = vld [vmem:[#allocation2 + $0x70] sm:$0xff]  ;;  %411 = vst.msk [vmem:[#allocation2 + $0xe8] sm:$0xff] %vm383_vm1, %v380_v21  ;;  %2615 = vmatprep.subr.bf16.mxu0 %v2854_v47  ;;  %v1713_v10 = vld [vmem:[%s3848_s5 + $0xe0] sm:$0xff] }
 0x101   :  { %v367_v31 = vmax.f32 %v210_v55, 0.0  ;;  %2170 = vmatprep.mubr.msk.f32.mxu0 %vm383_vm1, %v427_v28  ;;  %v213_v32 = vpop.f32.mrb[12].mxu0  ;;  %408 = vst.msk [vmem:[#allocation2 + $0xd0] sm:$0xff] %vm383_vm1, %v377_v25  ;;  %2647 = vmatpush3.bf16.msra.mxu1 %v2646_v18  ;;  %v2628_v12 = vpack.c.bf16 %v1714_v11, %v1713_v10  ;;  %v2631_v18 = vpack.c.bf16 %v1716_v17, %v1715_v15  ;;  %v1718_v28 = vld [vmem:[%s3848_s5 + $0x108] sm:$0xff]  ;;  %v1724_v10 = vld [vmem:[%s3848_s5 + $0x138] sm:$0xff] }
 0x102   :  { %2171 = vmatmul.mubr.msk.f32.gmra.mrb[24].mxu0 %vm383_vm1, %v430_v24  ;;  %v214_v34 = vadd.f32 %v213_v32, %v3167_v57  ;;  %v215_v35 = vpop.f32.mrb[13].mxu0  ;;  %2648 = vmatprep.subr.bf16.mxu1 %v2854_v47  ;;  %v3338_v24 = vld [vmem:[%s3849_s4] ss:$0 sm:$0xff] }
 0x103   :  { %609 = vmatprep.mubr.f32.mxu1 %v367_v31  ;;  %v216_v36 = vadd.f32 %v215_v35, %v3163_v54  ;;  %v436_v37 = vld [vmem:[#allocation2 + $0xb8] sm:$0xff]  ;;  %2617 = vmatpush3.bf16.msra.mxu0 %v2616_v26  ;;  %v1733_v32 = vld [vmem:[%s3848_s5 + $0x180] sm:$0xff] }
 0x104   :  { %610 = vmatmul.mubr.f32.gmra.mrb[20].mxu1 %v366_v27  ;;  %v369_v39 = vmax.f32 %v214_v34, 0.0  ;;  %v433_v40 = vld [vmem:[#allocation2 + $0xa0] sm:$0xff]  ;;  %2618 = vmatprep.subr.bf16.mxu0 %v2854_v47 }
 0x105   :  { %v370_v43 = vmax.f32 %v216_v36, 0.0  ;;  %v219_v44 = vpop.f32.mrb[14].mxu0  ;;  %2173 = vmatprep.mubr.msk.f32.mxu0 %vm383_vm1, %v433_v40  ;;  %2650 = vmatpush3.bf16.msra.mxu1 %v2649_v33  ;;  %v1717_v27 = vld [vmem:[%s3848_s5 + $0x100] sm:$0xff]  ;;  %v1734_v33 = vld [vmem:[%s3848_s5 + $0x188] sm:$0xff] }
 0x106   :  { %v220_v45 = vadd.f32 %v219_v44, %v3167_v57  ;;  %v221_v46 = vpop.f32.mrb[15].mxu0  ;;  %2174 = vmatmul.mubr.msk.f32.gmra.mrb[26].mxu0 %vm383_vm1, %v436_v37  ;;  %2651 = vmatprep.subr.bf16.mxu1 %v2854_v47  ;;  %v2682_v42 = vpack.c.bf16 %v1734_v33, %v1733_v32  ;;  %v1720_v44 = vld [vmem:[%s3848_s5 + $0x118] sm:$0xff] }
 0x107   :  { %v222_v48 = vadd.f32 %v221_v46, %v3163_v54  ;;  %614 = vmatprep.mubr.f32.mxu1 %v370_v43  ;;  %v442_v49 = vld [vmem:[#allocation2 + $0xe8] sm:$0xff]  ;;  %2620 = vmatpush3.bf16.msra.mxu0 %v2619_v38  ;;  %v2658_v38 = vpack.c.bf16 %v1718_v28, %v1717_v27  ;;  %v1719_v43 = vld [vmem:[%s3848_s5 + $0x110] sm:$0xff] }
 0x108   :  { %v372_v51 = vmax.f32 %v220_v45, 0.0  ;;  %615 = vmatmul.mubr.f32.gmra.mrb[22].mxu1 %v369_v39  ;;  %v439_v52 = vld [vmem:[#allocation2 + $0xd0] sm:$0xff]  ;;  %2621 = vmatprep.subr.bf16.mxu0 %v2854_v47 }
 0x109   :  { %v373_v53 = vmax.f32 %v222_v48, 0.0  ;;  %v225_v56 = vpop.f32.mrb[16].mxu0  ;;  %2176 = vmatprep.mubr.msk.f32.mxu0 %vm383_vm1, %v439_v52  ;;  %v1735_v48 = vld [vmem:[%s3848_s5 + $0x190] sm:$0xff] }
 0x10a   :  { %v226_v58 = vadd.f32 %v225_v56, %v3167_v57  ;;  %v227_v59 = vpop.f32.mrb[17].mxu0  ;;  %2177 = vmatmul.mubr.msk.f32.gmra.mrb[28].mxu0 %vm383_vm1, %v442_v49  ;;  %v1736_v49 = vld [vmem:[%s3848_s5 + $0x198] sm:$0xff] }
 0x10b   :  { %619 = vmatprep.mubr.f32.mxu1 %v373_v53  ;;  %v228_v60 = vadd.f32 %v227_v59, %v3163_v54  ;;  %2623 = vmatpush3.bf16.msra.mxu0 %v2622_v50  ;;  %v2661_v53 = vpack.c.bf16 %v1720_v44, %v1719_v43 }
 0x10c   :  { %620 = vmatmul.mubr.f32.gmra.mrb[24].mxu1 %v372_v51  ;;  %v375_v61 = vmax.f32 %v226_v58, 0.0  ;;  %2624 = vmatprep.subr.bf16.mxu0 %v2854_v47 }
 0x10d   :  { %v376_v62 = vmax.f32 %v228_v60, 0.0  ;;  %v231_v63 = vpop.f32.mrb[18].mxu0  ;;  %2211 = vmatprep.mubr.msk.f32.mxu0 %vm2855_vm2, %v2853_v3  ;;  %v2685_v60 = vpack.c.bf16 %v1736_v49, %v1735_v48  ;;  %v1745_v49 = vld [vmem:[%s3848_s5 + $0x1e0] sm:$0xff] }
 0x10e   :  { %v232_v0 = vadd.f32 %v231_v63, %v3167_v57  ;;  %v233_v1 = vpop.f32.mrb[19].mxu0  ;;  %v783_v57 = vld [vmem:[%s3848_s5 + $0x60] sm:$0xff] }
 0x10f   :  { %v234_v2 = vadd.f32 %v233_v1, %v3163_v54  ;;  %624 = vmatprep.mubr.f32.mxu1 %v376_v62  ;;  %v784_v54 = vld [vmem:[%s3848_s5 + $0x68] sm:$0xff]  ;;  %2626 = vmatpush3.bf16.msra.mxu0 %v2625_v8 }
 0x110   :  { %v378_v4 = vmax.f32 %v232_v0, 0.0  ;;  %625 = vmatmul.mubr.f32.gmra.mrb[26].mxu1 %v375_v61  ;;  %v2652_v9 = vpack.c.bf16 %v784_v54, %v783_v57  ;;  %2627 = vmatprep.subr.bf16.mxu0 %v2854_v47  ;;  %v1721_v61 = vld [vmem:[%s3848_s5 + $0x120] sm:$0xff]  ;;  %v1722_v62 = vld [vmem:[%s3848_s5 + $0x128] sm:$0xff] }
 0x111   :  { %v379_v5 = vmax.f32 %v234_v2, 0.0  ;;  %v1737_v0 = vld [vmem:[%s3848_s5 + $0x1a0] sm:$0xff]  ;;  %v1738_v1 = vld [vmem:[%s3848_s5 + $0x1a8] sm:$0xff]  ;;  %v2664_v7 = vpack.c.bf16 %v1722_v62, %v1721_v61  ;;  %v1731_v61 = vld [vmem:[%s3848_s5 + $0x170] sm:$0xff] }
 0x112   :  { %2653 = vmatpush3.bf16.msra.mxu1 %v2652_v9  ;;  %v2688_v54 = vpack.c.bf16 %v1738_v1, %v1737_v0  ;;  %v1723_v9 = vld [vmem:[%s3848_s5 + $0x130] sm:$0xff]  ;;  %v1732_v62 = vld [vmem:[%s3848_s5 + $0x178] sm:$0xff] }
 0x113   :  { %629 = vmatprep.mubr.f32.mxu1 %v379_v5  ;;  %2654 = vmatprep.subr.bf16.mxu1 %v2854_v47  ;;  %v2667_v17 = vpack.c.bf16 %v1724_v10, %v1723_v9  ;;  %v1747_v0 = vld [vmem:[%s3848_s5 + $0x1f0] sm:$0xff]  ;;  %v1748_v1 = vld [vmem:[%s3848_s5 + $0x1f8] sm:$0xff]  ;;  %v1765_v9 = vld [vmem:[%s3848_s5 + $0x280] sm:$0xff] }
 0x114   :  { %630 = vmatmul.mubr.f32.gmra.mrb[28].mxu1 %v378_v4  ;;  %2629 = vmatpush3.bf16.msra.mxu0 %v2628_v12  ;;  %v1740_v12 = vld [vmem:[%s3848_s5 + $0x1b8] sm:$0xff] }
 0x115   :  { %2630 = vmatprep.subr.bf16.mxu0 %v2854_v47  ;;  %2246 = vmatprep.mubr.msk.f32.mxu1 %vm2855_vm2, %v2853_v3 }
 0x116   :  { %2656 = vmatpush3.bf16.msra.mxu1 %v2655_v16 }
 0x117   :  { %2681 = vmatprep.subr.bf16.mxu1 %v2854_v47 }
 0x118   :  { %2632 = vmatpush3.bf16.msra.mxu0 %v2631_v18 }
 0x119   :  { %2657 = vmatprep.subr.bf16.mxu0 %v2854_v47 }
 0x1c3   :  { %v1897_v19 = vpop.f32.mrb[10].mxu1 }
 0x1c4   :  { %v1898_v20 = vpop.f32.mrb[11].mxu1 }
 0x1c5   :  { %v1899_v21 = vadd.f32 %v1898_v20, %v1897_v19 }
 0x1c7   :  { %v1900_v22 = vpop.f32.mrb[12].mxu1  ;;  %v587_v31 = vadd.f32 %v1899_v21, %v3338_v24  ;;  %v1725_v21 = vld [vmem:[%s3848_s5 + $0x140] sm:$0xff] }
 0x1c8   :  { %v1901_v23 = vpop.f32.mrb[13].mxu1 }
 0x1c9   :  { %v1902_v55 = vadd.f32 %v1901_v23, %v1900_v22  ;;  %v1726_v22 = vld [vmem:[%s3848_s5 + $0x148] sm:$0xff] }
 0x1cb   :  { %v592_v25 = vadd.f32 %v1902_v55, %v3338_v24  ;;  %v1903_v26 = vpop.f32.mrb[14].mxu1  ;;  %v1741_v55 = vld [vmem:[%s3848_s5 + $0x1c0] sm:$0xff] }
 0x1cc   :  { %v1904_v29 = vpop.f32.mrb[15].mxu1 }
 0x1cd   :  { %v2166_v30 = vpop.f32.mrb[20].mxu0  ;;  %v1905_v34 = vadd.f32 %v1904_v29, %v1903_v26 }
 0x1ce   :  { %v707_v35 = vadd.f32 %v2166_v30, %v592_v25  ;;  %v701_v36 = vpop.f32.mrb[21].mxu0  ;;  %v1742_v25 = vld [vmem:[%s3848_s5 + $0x1c8] sm:$0xff]  ;;  %v2670_v30 = vpack.c.bf16 %v1726_v22, %v1725_v21  ;;  %v1769_v21 = vld [vmem:[%s3848_s5 + $0x2a0] sm:$0xff] }
 0x1cf   :  { %v702_v37 = vadd.f32 %v701_v36, %v587_v31  ;;  %v1906_v39 = vpop.f32.mrb[16].mxu1  ;;  %v597_v40 = vadd.f32 %v1905_v34, %v3338_v24  ;;  %v2694_v33 = vpack.c.bf16 %v1742_v25, %v1741_v55  ;;  %v1727_v34 = vld [vmem:[%s3848_s5 + $0x150] sm:$0xff]  ;;  %v1770_v22 = vld [vmem:[%s3848_s5 + $0x2a8] sm:$0xff] }
 0x1d0   :  { %v751_v41 = vmax.f32 %v707_v35, 0.0  ;;  %v1907_v45 = vpop.f32.mrb[17].mxu1  ;;  %v1728_v35 = vld [vmem:[%s3848_s5 + $0x158] sm:$0xff]  ;;  %v2736_v25 = vpack.c.bf16 %v1770_v22, %v1769_v21 }
 0x1d1   :  { %v750_v46 = vmax.f32 %v702_v37, 0.0  ;;  %v1908_v50 = vadd.f32 %v1907_v45, %v1906_v39  ;;  %v2169_v51 = vpop.f32.mrb[22].mxu0  ;;  %v1743_v37 = vld [vmem:[%s3848_s5 + $0x1d0] sm:$0xff]  ;;  %v1729_v45 = vld [vmem:[%s3848_s5 + $0x160] sm:$0xff] }
 0x1d2   :  { %2212 = vmatmul.mubr.f32.vlgmr.msra.gmra.mrb[30].mxu0 %v751_v41  ;;  %v711_v52 = vpop.f32.mrb[23].mxu0  ;;  %v2673_v41 = vpack.c.bf16 %v1728_v35, %v1727_v34  ;;  %v1758_v34 = vld [vmem:[%s3848_s5 + $0x248] sm:$0xff]  ;;  %v1773_v35 = vld [vmem:[%s3848_s5 + $0x2c0] sm:$0xff] }
 0x1d3   :  { %2247 = vmatmul.mubr.f32.vlgmr.msra.gmra.mrb[30].mxu1 %v750_v46  ;;  %2659 = vmatpush3.bf16.msra.mxu0 %v2658_v38  ;;  %v602_v56 = vadd.f32 %v1908_v50, %v3338_v24  ;;  %v3368_v58 = vadd.f32 %v711_v52, %v597_v40  ;;  %v1909_v59 = vpop.f32.mrb[18].mxu1  ;;  %v1744_v38 = vld [vmem:[%s3848_s5 + $0x1d8] sm:$0xff]  ;;  %v1730_v46 = vld [vmem:[%s3848_s5 + $0x168] sm:$0xff] }
 0x1d4   :  { %2683 = vmatpush3.bf16.msra.mxu1 %v2682_v42  ;;  %2660 = vmatprep.subr.bf16.mxu0 %v2854_v47  ;;  %v1910_v63 = vpop.f32.mrb[19].mxu1  ;;  %v2697_v44 = vpack.c.bf16 %v1744_v38, %v1743_v37  ;;  %v1746_v50 = vld [vmem:[%s3848_s5 + $0x1e8] sm:$0xff] }
 0x1d5   :  { %2684 = vmatprep.subr.bf16.mxu1 %v2854_v47  ;;  %v3384_v2 = vadd.f32 %v2169_v51, %v602_v56  ;;  %2316 = vmatprep.mubr.msk.f32.mxu1 %vm2855_vm2, %v2853_v3  ;;  %v1911_v4 = vadd.f32 %v1910_v63, %v1909_v59  ;;  %v2172_v5 = vpop.f32.mrb[24].mxu0 }
 0x1d6   :  { %2281 = vmatprep.mubr.msk.f32.mxu0 %vm2855_vm2, %v2853_v3  ;;  %v721_v6 = vpop.f32.mrb[25].mxu0  ;;  %v1739_v3 = vld [vmem:[%s3848_s5 + $0x1b0] sm:$0xff] }
 0x1d7   :  { %2662 = vmatpush3.bf16.msra.mxu0 %v2661_v53  ;;  %v1912_v8 = vpop.f32.mrb[20].mxu1  ;;  %v607_v57 = vadd.f32 %v1911_v4, %v3338_v24  ;;  %v2691_v20 = vpack.c.bf16 %v1740_v12, %v1739_v3  ;;  %v2676_v53 = vpack.c.bf16 %v1730_v46, %v1729_v45  ;;  %v752_v3 = vmax.f32 %v3368_v58, 0.0  ;;  %v1767_v58 = vld [vmem:[%s3848_s5 + $0x290] sm:$0xff]  ;;  %v1761_v46 = vld [vmem:[%s3848_s5 + $0x260] sm:$0xff] }
 0x1d8   :  { %2686 = vmatpush3.bf16.msra.mxu1 %v2685_v60  ;;  %2663 = vmatprep.subr.bf16.mxu0 %v2854_v47  ;;  %v1913_v11 = vpop.f32.mrb[21].mxu1  ;;  %v2700_v60 = vpack.c.bf16 %v1746_v50, %v1745_v49  ;;  %v1777_v49 = vld [vmem:[%s3848_s5 + $0x2e0] sm:$0xff]  ;;  %v1778_v50 = vld [vmem:[%s3848_s5 + $0x2e8] sm:$0xff] }
 0x1d9   :  { %2687 = vmatprep.subr.bf16.mxu1 %v2854_v47  ;;  %v1914_v13 = vadd.f32 %v1913_v11, %v1912_v8  ;;  %v3405_v14 = vadd.f32 %v721_v6, %v607_v57  ;;  %v2175_v15 = vpop.f32.mrb[26].mxu0  ;;  %v2679_v6 = vpack.c.bf16 %v1732_v62, %v1731_v61  ;;  %v2703_v8 = vpack.c.bf16 %v1748_v1, %v1747_v0  ;;  %v1749_v57 = vld [vmem:[%s3848_s5 + $0x200] sm:$0xff]  ;;  %v1780_v61 = vld [vmem:[%s3848_s5 + $0x2f8] sm:$0xff]  ;;  %v1782_v1 = vld [vmem:[%s3848_s5 + $0x308] sm:$0xff] }
 0x1da   :  { %v731_v16 = vpop.f32.mrb[27].mxu0  ;;  %v1781_v0 = vld [vmem:[%s3848_s5 + $0x300] sm:$0xff] }
 0x1db   :  { %2665 = vmatpush3.bf16.msra.mxu0 %v2664_v7  ;;  %v612_v18 = vadd.f32 %v1914_v13, %v3338_v24  ;;  %v1915_v19 = vpop.f32.mrb[22].mxu1  ;;  %v1751_v13 = vld [vmem:[%s3848_s5 + $0x210] sm:$0xff] }
 0x1dc   :  { %2689 = vmatpush3.bf16.msra.mxu1 %v2688_v54  ;;  %2666 = vmatprep.subr.bf16.mxu0 %v2854_v47  ;;  %v1916_v23 = vpop.f32.mrb[23].mxu1  ;;  %v1750_v54 = vld [vmem:[%s3848_s5 + $0x208] sm:$0xff] }
 0x1dd   :  { %2690 = vmatprep.subr.bf16.mxu1 %v2854_v47  ;;  %v3422_v26 = vadd.f32 %v2172_v5, %v612_v18  ;;  %v1917_v27 = vadd.f32 %v1916_v23, %v1915_v19  ;;  %v2178_v28 = vpop.f32.mrb[28].mxu0  ;;  %v2706_v11 = vpack.c.bf16 %v1750_v54, %v1749_v57  ;;  %v3522_v23 = vld [vmem:[#allocation2] sm:$0xff]  ;;  %v1783_v54 = vld [vmem:[%s3848_s5 + $0x310] sm:$0xff] }
 0x1de   :  { %v741_v29 = vpop.f32.mrb[29].mxu0 }
 0x1df   :  { %2668 = vmatpush3.bf16.msra.mxu0 %v2667_v17  ;;  %v1918_v31 = vpop.f32.mrb[24].mxu1  ;;  %v617_v32 = vadd.f32 %v1917_v27, %v3338_v24  ;;  %v1768_v17 = vld [vmem:[%s3848_s5 + $0x298] sm:$0xff]  ;;  %v1755_v27 = vld [vmem:[%s3848_s5 + $0x230] sm:$0xff] }
 0x1e0   :  { %2692 = vmatpush3.bf16.msra.mxu1 %v2691_v20  ;;  %2669 = vmatprep.subr.bf16.mxu0 %v2854_v47  ;;  %v1919_v36 = vpop.f32.mrb[25].mxu1  ;;  %v2733_v19 = vpack.c.bf16 %v1768_v17, %v1767_v58  ;;  %v1754_v20 = vld [vmem:[%s3848_s5 + $0x228] sm:$0xff] }
 0x1e1   :  { %2693 = vmatprep.subr.bf16.mxu1 %v2854_v47  ;;  %v1920_v39 = vadd.f32 %v1919_v36, %v1918_v31  ;;  %v3439_v40 = vadd.f32 %v731_v16, %v617_v32  ;;  %v753_v16 = vmax.f32 %v3384_v2, 0.0  ;;  %v1753_v2 = vld [vmem:[%s3848_s5 + $0x220] sm:$0xff]  ;;  %v1774_v36 = vld [vmem:[%s3848_s5 + $0x2c8] sm:$0xff] }
 0x1e2   :  { %v2712_v55 = vpack.c.bf16 %v1754_v20, %v1753_v2  ;;  %v2742_v38 = vpack.c.bf16 %v1774_v36, %v1773_v35  ;;  %v1803_v2 = vld [vmem:[%s3848_s5 + $0x3b0] sm:$0xff]  ;;  %v1804_v20 = vld [vmem:[%s3848_s5 + $0x3b8] sm:$0xff] }
 0x1e3   :  { %2671 = vmatpush3.bf16.msra.mxu0 %v2670_v30  ;;  %v622_v42 = vadd.f32 %v1920_v39, %v3338_v24  ;;  %v1921_v43 = vpop.f32.mrb[26].mxu1  ;;  %v1772_v30 = vld [vmem:[%s3848_s5 + $0x2b8] sm:$0xff]  ;;  %v1759_v39 = vld [vmem:[%s3848_s5 + $0x250] sm:$0xff]  ;;  %v2787_v22 = vpack.c.bf16 %v1804_v20, %v1803_v2 }
 0x1e4   :  { %2695 = vmatpush3.bf16.msra.mxu1 %v2694_v33  ;;  %2672 = vmatprep.subr.bf16.mxu0 %v2854_v47  ;;  %v1922_v48 = vpop.f32.mrb[27].mxu1  ;;  %v1757_v33 = vld [vmem:[%s3848_s5 + $0x240] sm:$0xff]  ;;  %v1824_v2 = vld [vmem:[%s3848_s5 + $0x458] sm:$0xff]  ;;  %v1839_v20 = vld [vmem:[%s3848_s5 + $0x4d0] sm:$0xff] }
 0x1e5   :  { %2696 = vmatprep.subr.bf16.mxu1 %v2854_v47  ;;  %v3456_v51 = vadd.f32 %v2175_v15, %v622_v42  ;;  %v1923_v52 = vadd.f32 %v1922_v48, %v1921_v43  ;;  %v1752_v15 = vld [vmem:[%s3848_s5 + $0x218] sm:$0xff]  ;;  %v2718_v37 = vpack.c.bf16 %v1758_v34, %v1757_v33  ;;  %v1775_v42 = vld [vmem:[%s3848_s5 + $0x2d0] sm:$0xff]  ;;  %v1762_v48 = vld [vmem:[%s3848_s5 + $0x268] sm:$0xff] }
 0x1e6   :  { %v2709_v18 = vpack.c.bf16 %v1752_v15, %v1751_v13  ;;  %v1776_v43 = vld [vmem:[%s3848_s5 + $0x2d8] sm:$0xff]  ;;  %v1786_v13 = vld [vmem:[%s3848_s5 + $0x328] sm:$0xff]  ;;  %v1801_v15 = vld [vmem:[%s3848_s5 + $0x3a0] sm:$0xff] }
 0x1e7   :  { %2674 = vmatpush3.bf16.msra.mxu0 %v2673_v41  ;;  %v1924_v56 = vpop.f32.mrb[28].mxu1  ;;  %v627_v59 = vadd.f32 %v1923_v52, %v3338_v24  ;;  %v1760_v41 = vld [vmem:[%s3848_s5 + $0x258] sm:$0xff]  ;;  %v2745_v45 = vpack.c.bf16 %v1776_v43, %v1775_v42  ;;  %v2724_v52 = vpack.c.bf16 %v1762_v48, %v1761_v46  ;;  %v1807_v33 = vld [vmem:[%s3848_s5 + $0x3d0] sm:$0xff] }
 0x1e8   :  { %2698 = vmatpush3.bf16.msra.mxu1 %v2697_v44  ;;  %2675 = vmatprep.subr.bf16.mxu0 %v2854_v47  ;;  %v1925_v63 = vpop.f32.mrb[29].mxu1  ;;  %v2721_v44 = vpack.c.bf16 %v1760_v41, %v1759_v39  ;;  %v1808_v34 = vld [vmem:[%s3848_s5 + $0x3d8] sm:$0xff]  ;;  %v1809_v39 = vld [vmem:[%s3848_s5 + $0x3e0] sm:$0xff]  ;;  %v1810_v41 = vld [vmem:[%s3848_s5 + $0x3e8] sm:$0xff] }
 0x1e9   :  { %2699 = vmatprep.subr.bf16.mxu1 %v2854_v47  ;;  %v1926_v4 = vadd.f32 %v1925_v63, %v1924_v56  ;;  %v3473_v5 = vadd.f32 %v741_v29, %v627_v59  ;;  %v1771_v29 = vld [vmem:[%s3848_s5 + $0x2b0] sm:$0xff]  ;;  %v1764_v59 = vld [vmem:[%s3848_s5 + $0x278] sm:$0xff]  ;;  %v2793_v36 = vpack.c.bf16 %v1808_v34, %v1807_v33  ;;  %v2796_v43 = vpack.c.bf16 %v1810_v41, %v1809_v39 }
 0x1ea   :  { %v2739_v32 = vpack.c.bf16 %v1772_v30, %v1771_v29  ;;  %v1763_v56 = vld [vmem:[%s3848_s5 + $0x270] sm:$0xff]  ;;  %v1812_v48 = vld [vmem:[%s3848_s5 + $0x3f8] sm:$0xff] }
 0x1eb   :  { %2677 = vmatpush3.bf16.msra.mxu0 %v2676_v53  ;;  %v632_v7 = vadd.f32 %v1926_v4, %v3338_v24  ;;  %v1766_v24 = vld [vmem:[%s3848_s5 + $0x288] sm:$0xff]  ;;  %v2748_v53 = vpack.c.bf16 %v1778_v50, %v1777_v49  ;;  %v2727_v62 = vpack.c.bf16 %v1764_v59, %v1763_v56  ;;  %v1797_v4 = vld [vmem:[%s3848_s5 + $0x380] sm:$0xff]  ;;  %v1811_v46 = vld [vmem:[%s3848_s5 + $0x3f0] sm:$0xff] }
 0x1ec   :  { %2701 = vmatpush3.bf16.msra.mxu1 %v2700_v60  ;;  %2678 = vmatprep.subr.bf16.mxu0 %v2854_v47  ;;  %v2730_v12 = vpack.c.bf16 %v1766_v24, %v1765_v9  ;;  %v1779_v60 = vld [vmem:[%s3848_s5 + $0x2f0] sm:$0xff]  ;;  %v1784_v9 = vld [vmem:[%s3848_s5 + $0x318] sm:$0xff]  ;;  %v755_v24 = vmax.f32 %v3422_v26, 0.0  ;;  %v1785_v26 = vld [vmem:[%s3848_s5 + $0x320] sm:$0xff]  ;;  %v2799_v50 = vpack.c.bf16 %v1812_v48, %v1811_v46 }
 0x1ed   :  { %2702 = vmatprep.subr.bf16.mxu1 %v2854_v47  ;;  %v3490_v10 = vadd.f32 %v2178_v28, %v632_v7  ;;  %v1756_v28 = vld [vmem:[%s3848_s5 + $0x238] sm:$0xff]  ;;  %v2751_v63 = vpack.c.bf16 %v1780_v61, %v1779_v60  ;;  %v2754_v7 = vpack.c.bf16 %v1782_v1, %v1781_v0  ;;  %v2760_v58 = vpack.c.bf16 %v1786_v13, %v1785_v26  ;;  %v1829_v56 = vld [vmem:[%s3848_s5 + $0x480] sm:$0xff]  ;;  %v1830_v59 = vld [vmem:[%s3848_s5 + $0x488] sm:$0xff] }
 0x1ee   :  { %v2715_v31 = vpack.c.bf16 %v1756_v28, %v1755_v27  ;;  %v1805_v27 = vld [vmem:[%s3848_s5 + $0x3c0] sm:$0xff]  ;;  %v1806_v28 = vld [vmem:[%s3848_s5 + $0x3c8] sm:$0xff]  ;;  %v756_v61 = vmax.f32 %v3439_v40, 0.0  ;;  %v1816_v0 = vld [vmem:[%s3848_s5 + $0x418] sm:$0xff]  ;;  %v757_v1 = vmax.f32 %v3456_v51, 0.0 }
 0x1ef   :  { %2680 = vmatpush3.bf16.msra.mxu0 %v2679_v6  ;;  %v1798_v6 = vld [vmem:[%s3848_s5 + $0x388] sm:$0xff]  ;;  %v2790_v30 = vpack.c.bf16 %v1806_v28, %v1805_v27  ;;  %v1831_v40 = vld [vmem:[%s3848_s5 + $0x490] sm:$0xff]  ;;  %v1817_v51 = vld [vmem:[%s3848_s5 + $0x420] sm:$0xff]  ;;  %v759_v39 = vmax.f32 %v3490_v10, 0.0 }
 0x1f0   :  { %2704 = vmatpush3.bf16.msra.mxu1 %v2703_v8  ;;  %2705 = vmatprep.subr.bf16.mxu0 %v2854_v47  ;;  %v754_v8 = vmax.f32 %v3405_v14, 0.0  ;;  %v2778_v57 = vpack.c.bf16 %v1798_v6, %v1797_v4  ;;  %v1799_v14 = vld [vmem:[%s3848_s5 + $0x390] sm:$0xff]  ;;  %v1832_v4 = vld [vmem:[%s3848_s5 + $0x498] sm:$0xff]  ;;  %v1821_v13 = vld [vmem:[%s3848_s5 + $0x440] sm:$0xff] }
 0x1f1   :  { %2729 = vmatprep.subr.bf16.mxu1 %v2854_v47  ;;  %v1826_v27 = vld [vmem:[%s3848_s5 + $0x468] sm:$0xff]  ;;  %v1841_v28 = vld [vmem:[%s3848_s5 + $0x4e0] sm:$0xff]  ;;  %v1828_v33 = vld [vmem:[%s3848_s5 + $0x478] sm:$0xff] }
 0x1f2   :  { %2282 = vmatmul.mubr.f32.vlgmr.msra.gmra.mrb[32].mxu0 %v752_v3  ;;  %v2757_v3 = vpack.c.bf16 %v1784_v9, %v1783_v54  ;;  %v1834_v54 = vld [vmem:[%s3848_s5 + $0x4a8] sm:$0xff]  ;;  %v1843_v34 = vld [vmem:[%s3848_s5 + $0x4f0] sm:$0xff] }
 0x1f3   :  { %2317 = vmatmul.mubr.f32.vlgmr.msra.gmra.mrb[32].mxu1 %v753_v16  ;;  %2707 = vmatpush3.bf16.msra.mxu0 %v2706_v11  ;;  %v1800_v11 = vld [vmem:[%s3848_s5 + $0x398] sm:$0xff]  ;;  %v1802_v16 = vld [vmem:[%s3848_s5 + $0x3a8] sm:$0xff] }
 0x1f4   :  { %2731 = vmatpush3.bf16.msra.mxu1 %v2730_v12  ;;  %2708 = vmatprep.subr.bf16.mxu0 %v2854_v47  ;;  %v2781_v12 = vpack.c.bf16 %v1800_v11, %v1799_v14  ;;  %v2784_v17 = vpack.c.bf16 %v1802_v16, %v1801_v15  ;;  %v1819_v14 = vld [vmem:[%s3848_s5 + $0x430] sm:$0xff]  ;;  %v1820_v11 = vld [vmem:[%s3848_s5 + $0x438] sm:$0xff]  ;;  %v1822_v15 = vld [vmem:[%s3848_s5 + $0x448] sm:$0xff] }
 0x1f5   :  { %2732 = vmatprep.subr.bf16.mxu1 %v2854_v47  ;;  %2386 = vmatprep.mubr.msk.f32.mxu1 %vm2855_vm2, %v3522_v23  ;;  %v1837_v16 = vld [vmem:[%s3848_s5 + $0x4c0] sm:$0xff] }
 0x1f6   :  { %2351 = vmatprep.mubr.msk.f32.mxu0 %vm2855_vm2, %v3522_v23 }
 0x1f7   :  { %2710 = vmatpush3.bf16.msra.mxu0 %v2709_v18  ;;  %v1787_v18 = vld [vmem:[%s3848_s5 + $0x330] sm:$0xff] }
 0x1f8   :  { %2734 = vmatpush3.bf16.msra.mxu1 %v2733_v19  ;;  %2711 = vmatprep.subr.bf16.mxu0 %v2854_v47  ;;  %v1788_v19 = vld [vmem:[%s3848_s5 + $0x338] sm:$0xff] }
 0x1f9   :  { %2735 = vmatprep.subr.bf16.mxu1 %v2854_v47  ;;  %v2763_v21 = vpack.c.bf16 %v1788_v19, %v1787_v18  ;;  %v1823_v19 = vld [vmem:[%s3848_s5 + $0x450] sm:$0xff] }
 0x1fb   :  { %2713 = vmatpush3.bf16.msra.mxu0 %v2712_v55  ;;  %v1789_v55 = vld [vmem:[%s3848_s5 + $0x340] sm:$0xff] }
 0x1fc   :  { %2737 = vmatpush3.bf16.msra.mxu1 %v2736_v25  ;;  %2714 = vmatprep.subr.bf16.mxu0 %v2854_v47  ;;  %v1790_v25 = vld [vmem:[%s3848_s5 + $0x348] sm:$0xff] }
 0x1fd   :  { %2738 = vmatprep.subr.bf16.mxu1 %v2854_v47  ;;  %v2766_v29 = vpack.c.bf16 %v1790_v25, %v1789_v55  ;;  %v1825_v25 = vld [vmem:[%s3848_s5 + $0x460] sm:$0xff] }
 0x1ff   :  { %2716 = vmatpush3.bf16.msra.mxu0 %v2715_v31  ;;  %v1791_v31 = vld [vmem:[%s3848_s5 + $0x350] sm:$0xff] }
 0x200   :  { %2740 = vmatpush3.bf16.msra.mxu1 %v2739_v32  ;;  %2717 = vmatprep.subr.bf16.mxu0 %v2854_v47  ;;  %v1792_v32 = vld [vmem:[%s3848_s5 + $0x358] sm:$0xff] }
 0x201   :  { %2741 = vmatprep.subr.bf16.mxu1 %v2854_v47  ;;  %v2769_v35 = vpack.c.bf16 %v1792_v32, %v1791_v31  ;;  %v1827_v32 = vld [vmem:[%s3848_s5 + $0x470] sm:$0xff] }
 0x203   :  { %2719 = vmatpush3.bf16.msra.mxu0 %v2718_v37  ;;  %v1793_v37 = vld [vmem:[%s3848_s5 + $0x360] sm:$0xff] }
 0x204   :  { %2743 = vmatpush3.bf16.msra.mxu1 %v2742_v38  ;;  %2720 = vmatprep.subr.bf16.mxu0 %v2854_v47  ;;  %v1794_v38 = vld [vmem:[%s3848_s5 + $0x368] sm:$0xff] }
 0x205   :  { %2744 = vmatprep.subr.bf16.mxu1 %v2854_v47  ;;  %v2772_v42 = vpack.c.bf16 %v1794_v38, %v1793_v37  ;;  %v758_v38 = vmax.f32 %v3473_v5, 0.0 }
 0x207   :  { %2722 = vmatpush3.bf16.msra.mxu0 %v2721_v44  ;;  %v1795_v44 = vld [vmem:[%s3848_s5 + $0x370] sm:$0xff] }
 0x208   :  { %2746 = vmatpush3.bf16.msra.mxu1 %v2745_v45  ;;  %2723 = vmatprep.subr.bf16.mxu0 %v2854_v47  ;;  %v1796_v45 = vld [vmem:[%s3848_s5 + $0x378] sm:$0xff] }
 0x209   :  { %2747 = vmatprep.subr.bf16.mxu1 %v2854_v47  ;;  %v2775_v49 = vpack.c.bf16 %v1796_v45, %v1795_v44 }
 0x20b   :  { %2725 = vmatpush3.bf16.msra.mxu0 %v2724_v52  ;;  %v1813_v52 = vld [vmem:[%s3848_s5 + $0x400] sm:$0xff] }
 0x20c   :  { %2749 = vmatpush3.bf16.msra.mxu1 %v2748_v53  ;;  %2726 = vmatprep.subr.bf16.mxu0 %v2854_v47  ;;  %v1814_v53 = vld [vmem:[%s3848_s5 + $0x408] sm:$0xff] }
 0x20d   :  { %2750 = vmatprep.subr.bf16.mxu1 %v2854_v47  ;;  %v2802_v60 = vpack.c.bf16 %v1814_v53, %v1813_v52 }
 0x20f   :  { %2728 = vmatpush3.bf16.msra.mxu0 %v2727_v62  ;;  %v2826_v62 = vpack.c.bf16 %v1830_v59, %v1829_v56 }
 0x210   :  { %2752 = vmatpush3.bf16.msra.mxu1 %v2751_v63  ;;  %2753 = vmatprep.subr.bf16.mxu0 %v2854_v47  ;;  %v1815_v63 = vld [vmem:[%s3848_s5 + $0x410] sm:$0xff] }
 0x211   :  { %2777 = vmatprep.subr.bf16.mxu1 %v2854_v47  ;;  %v2805_v6 = vpack.c.bf16 %v1816_v0, %v1815_v63 }
 0x212   :  { %2352 = vmatmul.mubr.f32.vlgmr.msra.gmra.mrb[34].mxu0 %v754_v8  ;;  %v1818_v8 = vld [vmem:[%s3848_s5 + $0x428] sm:$0xff] }
 0x213   :  { %2387 = vmatmul.mubr.f32.vlgmr.msra.gmra.mrb[34].mxu1 %v755_v24  ;;  %2755 = vmatpush3.bf16.msra.mxu0 %v2754_v7  ;;  %v2829_v7 = vpack.c.bf16 %v1832_v4, %v1831_v40  ;;  %v2808_v9 = vpack.c.bf16 %v1818_v8, %v1817_v51 }
 0x214   :  { %2779 = vmatpush3.bf16.msra.mxu1 %v2778_v57  ;;  %2756 = vmatprep.subr.bf16.mxu0 %v2854_v47  ;;  %v1833_v57 = vld [vmem:[%s3848_s5 + $0x4a0] sm:$0xff] }
 0x215   :  { %2780 = vmatprep.subr.bf16.mxu1 %v2854_v47  ;;  %2456 = vmatprep.mubr.msk.f32.mxu1 %vm2855_vm2, %v3522_v23  ;;  %v2832_v24 = vpack.c.bf16 %v1834_v54, %v1833_v57  ;;  %v1845_v57 = vld [vmem:[%s3850_s6] ss:$0 sm:$0xff] }
 0x216   :  { %2421 = vmatprep.mubr.msk.f32.mxu0 %vm2855_vm2, %v3522_v23 }
 0x217   :  { %2758 = vmatpush3.bf16.msra.mxu0 %v2757_v3  ;;  %v1836_v3 = vld [vmem:[%s3848_s5 + $0x4b8] sm:$0xff] }
 0x218   :  { %2782 = vmatpush3.bf16.msra.mxu1 %v2781_v12  ;;  %2759 = vmatprep.subr.bf16.mxu0 %v2854_v47  ;;  %v2811_v12 = vpack.c.bf16 %v1820_v11, %v1819_v14 }
 0x219   :  { %2783 = vmatprep.subr.bf16.mxu1 %v2854_v47 }
 0x21b   :  { %2761 = vmatpush3.bf16.msra.mxu0 %v2760_v58  ;;  %v1838_v58 = vld [vmem:[%s3848_s5 + $0x4c8] sm:$0xff] }
 0x21c   :  { %2785 = vmatpush3.bf16.msra.mxu1 %v2784_v17  ;;  %2762 = vmatprep.subr.bf16.mxu0 %v2854_v47  ;;  %v2814_v17 = vpack.c.bf16 %v1822_v15, %v1821_v13  ;;  %v2838_v18 = vpack.c.bf16 %v1838_v58, %v1837_v16 }
 0x21d   :  { %2786 = vmatprep.subr.bf16.mxu1 %v2854_v47 }
 0x21f   :  { %2764 = vmatpush3.bf16.msra.mxu0 %v2763_v21  ;;  %v1840_v21 = vld [vmem:[%s3848_s5 + $0x4d8] sm:$0xff] }
 0x220   :  { %2788 = vmatpush3.bf16.msra.mxu1 %v2787_v22  ;;  %2765 = vmatprep.subr.bf16.mxu0 %v2854_v47  ;;  %v2817_v22 = vpack.c.bf16 %v1824_v2, %v1823_v19  ;;  %v2841_v55 = vpack.c.bf16 %v1840_v21, %v1839_v20 }
 0x221   :  { %2789 = vmatprep.subr.bf16.mxu1 %v2854_v47 }
 0x223   :  { %2767 = vmatpush3.bf16.msra.mxu0 %v2766_v29  ;;  %v1842_v29 = vld [vmem:[%s3848_s5 + $0x4e8] sm:$0xff] }
 0x224   :  { %2791 = vmatpush3.bf16.msra.mxu1 %v2790_v30  ;;  %2768 = vmatprep.subr.bf16.mxu0 %v2854_v47  ;;  %v2820_v30 = vpack.c.bf16 %v1826_v27, %v1825_v25  ;;  %v2844_v31 = vpack.c.bf16 %v1842_v29, %v1841_v28 }
 0x225   :  { %2792 = vmatprep.subr.bf16.mxu1 %v2854_v47 }
 0x227   :  { %2770 = vmatpush3.bf16.msra.mxu0 %v2769_v35  ;;  %v1844_v35 = vld [vmem:[%s3848_s5 + $0x4f8] sm:$0xff] }
 0x228   :  { %2794 = vmatpush3.bf16.msra.mxu1 %v2793_v36  ;;  %2771 = vmatprep.subr.bf16.mxu0 %v2854_v47  ;;  %v2823_v36 = vpack.c.bf16 %v1828_v33, %v1827_v32  ;;  %v2847_v37 = vpack.c.bf16 %v1844_v35, %v1843_v34 }
 0x229   :  { %2795 = vmatprep.subr.bf16.mxu1 %v2854_v47 }
 0x22b   :  { %2773 = vmatpush3.bf16.msra.mxu0 %v2772_v42 }
 0x22c   :  { %2797 = vmatpush3.bf16.msra.mxu1 %v2796_v43  ;;  %2774 = vmatprep.subr.bf16.mxu0 %v2854_v47 }
 0x22d   :  { %2798 = vmatprep.subr.bf16.mxu1 %v2854_v47 }
 0x22f   :  { %2776 = vmatpush3.bf16.msra.mxu0 %v2775_v49 }
 0x230   :  { %2800 = vmatpush3.bf16.msra.mxu1 %v2799_v50  ;;  %2801 = vmatprep.subr.bf16.mxu0 %v2854_v47 }
 0x231   :  { %2825 = vmatprep.subr.bf16.mxu1 %v2854_v47 }
 0x232   :  { %2422 = vmatmul.mubr.f32.vlgmr.msra.gmra.mrb[36].mxu0 %v756_v61 }
 0x233   :  { %2457 = vmatmul.mubr.f32.vlgmr.msra.gmra.mrb[36].mxu1 %v757_v1  ;;  %2803 = vmatpush3.bf16.msra.mxu0 %v2802_v60 }
 0x234   :  { %2827 = vmatpush3.bf16.msra.mxu1 %v2826_v62  ;;  %2804 = vmatprep.subr.bf16.mxu0 %v2854_v47 }
 0x235   :  { %2828 = vmatprep.subr.bf16.mxu1 %v2854_v47  ;;  %2526 = vmatprep.mubr.msk.f32.mxu1 %vm2855_vm2, %v3522_v23 }
 0x236   :  { %2491 = vmatprep.mubr.msk.f32.mxu0 %vm2855_vm2, %v3522_v23  ;;  %v1835_v23 = vld [vmem:[%s3848_s5 + $0x4b0] sm:$0xff] }
 0x237   :  { %2806 = vmatpush3.bf16.msra.mxu0 %v2805_v6  ;;  %v2835_v26 = vpack.c.bf16 %v1836_v3, %v1835_v23 }
 0x238   :  { %2830 = vmatpush3.bf16.msra.mxu1 %v2829_v7  ;;  %2807 = vmatprep.subr.bf16.mxu0 %v2854_v47 }
 0x239   :  { %2831 = vmatprep.subr.bf16.mxu1 %v2854_v47 }
 0x23b   :  { %2809 = vmatpush3.bf16.msra.mxu0 %v2808_v9 }
 0x23c   :  { %2833 = vmatpush3.bf16.msra.mxu1 %v2832_v24  ;;  %2810 = vmatprep.subr.bf16.mxu0 %v2854_v47 }
 0x23d   :  { %2834 = vmatprep.subr.bf16.mxu1 %v2854_v47 }
 0x23f   :  { %2812 = vmatpush3.bf16.msra.mxu0 %v2811_v12 }
 0x240   :  { %2836 = vmatpush3.bf16.msra.mxu1 %v2835_v26  ;;  %2813 = vmatprep.subr.bf16.mxu0 %v2854_v47 }
 0x241   :  { %2837 = vmatprep.subr.bf16.mxu1 %v2854_v47 }
 0x243   :  { %2815 = vmatpush3.bf16.msra.mxu0 %v2814_v17 }
 0x244   :  { %2839 = vmatpush3.bf16.msra.mxu1 %v2838_v18  ;;  %2816 = vmatprep.subr.bf16.mxu0 %v2854_v47 }
 0x245   :  { %2840 = vmatprep.subr.bf16.mxu1 %v2854_v47 }
 0x247   :  { %2818 = vmatpush3.bf16.msra.mxu0 %v2817_v22 }
 0x248   :  { %2842 = vmatpush3.bf16.msra.mxu1 %v2841_v55  ;;  %2819 = vmatprep.subr.bf16.mxu0 %v2854_v47 }
 0x249   :  { %2843 = vmatprep.subr.bf16.mxu1 %v2854_v47 }
 0x24b   :  { %2821 = vmatpush3.bf16.msra.mxu0 %v2820_v30 }
 0x24c   :  { %2845 = vmatpush3.bf16.msra.mxu1 %v2844_v31  ;;  %2822 = vmatprep.subr.bf16.mxu0 %v2854_v47 }
 0x24d   :  { %2846 = vmatprep.subr.bf16.mxu1 %v2854_v47 }
 0x24f   :  { %2824 = vmatpush3.bf16.msra.mxu0 %v2823_v36 }
 0x250   :  { %2848 = vmatpush3.bf16.msra.mxu1 %v2847_v37 }
 0x252   :  { %2492 = vmatmul.mubr.f32.vlgmr.msra.gmra.mrb[38].mxu0 %v758_v38 }
 0x253   :  { %2527 = vmatmul.mubr.f32.vlgmr.msra.gmra.mrb[38].mxu1 %v759_v39 }
 0x2a5   :  { %v871_v41 = vpop.f32.mrb[30].mxu0 }
 0x2a6   :  { %v941_v42 = vpop.f32.mrb[30].mxu1  ;;  %v2213_v43 = vpop.f32.mrb[31].mxu0 }
 0x2a7   :  { %v2248_v44 = vpop.f32.mrb[31].mxu1  ;;  %v942_v45 = vadd.f32 %v941_v42, %v871_v41 }
 0x2c5   :  { %v1029_v46 = vpop.f32.mrb[32].mxu0 }
 0x2c6   :  { %v1118_v48 = vpop.f32.mrb[32].mxu1  ;;  %v1033_v49 = vadd.f32 %v1029_v46, %v942_v45  ;;  %v2283_v50 = vpop.f32.mrb[33].mxu0 }
 0x2c7   :  { %v2318_v52 = vpop.f32.mrb[33].mxu1 }
 0x2c8   :  { %v1122_v53 = vadd.f32 %v1118_v48, %v1033_v49 }
 0x2e5   :  { %v1207_v47 = vpop.f32.mrb[34].mxu0 }
 0x2e6   :  { %v1296_v56 = vpop.f32.mrb[34].mxu1  ;;  %v1211_v59 = vadd.f32 %v1207_v47, %v1122_v53  ;;  %v2353_v5 = vpop.f32.mrb[35].mxu0 }
 0x2e7   :  { %v2388_v60 = vpop.f32.mrb[35].mxu1 }
 0x2e8   :  { %v1300_v61 = vadd.f32 %v1296_v56, %v1211_v59 }
 0x305   :  { %v1385_v10 = vpop.f32.mrb[36].mxu0 }
 0x306   :  { %v1474_v62 = vpop.f32.mrb[36].mxu1  ;;  %v1389_v63 = vadd.f32 %v1385_v10, %v1300_v61  ;;  %v2423_v0 = vpop.f32.mrb[37].mxu0 }
 0x307   :  { %v2458_v1 = vpop.f32.mrb[37].mxu1 }
 0x308   :  { %v1478_v40 = vadd.f32 %v1474_v62, %v1389_v63 }
 0x325   :  { %v1563_v4 = vpop.f32.mrb[38].mxu0 }
 0x326   :  { %v1652_v6 = vpop.f32.mrb[38].mxu1  ;;  %v1567_v7 = vadd.f32 %v1563_v4, %v1478_v40  ;;  %v2493_v51 = vpop.f32.mrb[39].mxu0 }
 0x327   :  { %v2528_v8 = vpop.f32.mrb[39].mxu1 }
 0x328   :  { %v1656_v54 = vadd.f32 %v1652_v6, %v1567_v7 }
 0x32a   :  { %v1664_v9 = vadd.f32 %v1845_v57, %v1656_v54 }
 0x32c   :  { %1665 = vst [vmem:[%s3851_s7] sm:$0xff] %v1664_v9 }

</bundles_post_ra>
